<compile_context>
chip_gen: v7x
topology: tpu7x:2x2x1
jax: 0.10.0
libtpu: 0.0.40
codegen_flags: <defaults>
</compile_context>

<pallas_src>
import functools

import jax
import jax.numpy as jnp
from jax.experimental import pallas as pl
from jax.experimental.pallas import tpu as pltpu

LANE = 128  # pad every feature dim to a multiple of the 128-wide lane axis


def _round_up(n, m):
    return ((n + m - 1) // m) * m


def _pad2d(a, rows, cols, dtype):
    a = jnp.asarray(a, dtype)
    pr, pc = rows - a.shape[0], cols - a.shape[1]
    if pr or pc:
        a = jnp.pad(a, ((0, pr), (0, pc)))
    return a


# ----------------------------------------------------------------------------
# One-time parameter preparation: pad feature dims to 128 lanes, cast matmul
# operands to bf16 (biases stay f32 for the f32 elementwise tail).
# ----------------------------------------------------------------------------
def prepare_deepsets_params(params, *, matmul_dtype=jnp.bfloat16):
    has_enc = "enc" in params
    num_layers = len(params["layers"])

    if has_enc:
        in_dim, hidden = params["enc"][0].shape
    else:
        hidden = (params["layers"][0][0].shape[0] if num_layers
                  else params["dec"][0].shape[0])
        in_dim = hidden
    out_dim = params["dec"][0].shape[1]

    dpi = _round_up(in_dim, LANE)
    hp = _round_up(hidden, LANE)
    dpo = _round_up(out_dim, LANE)

    flat = []

    def add_linear(w, b, rin, rout):
        flat.append(_pad2d(w, rin, rout, matmul_dtype))   # (rin, rout) bf16
        flat.append(_pad2d(b, 1, rout, jnp.float32))      # (1, rout)   f32

    if has_enc:
        add_linear(*params["enc"], dpi, hp)
    for (w1, b1, w2, b2) in params["layers"]:
        add_linear(w1, b1, hp, hp)
        add_linear(w2, b2, hp, hp)
    add_linear(*params["dec"], hp, dpo)

    return dict(flat=tuple(flat), has_enc=has_enc, num_layers=num_layers,
                in_dim=in_dim, hidden=hidden, out_dim=out_dim,
                in_dim_p=dpi, hidden_p=hp, out_dim_p=dpo)


# ----------------------------------------------------------------------------
# Fused Pallas kernel: encoder -> num_layers DeepSets layers -> decoder
# ----------------------------------------------------------------------------
def _fused_deepsets_kernel(*refs, has_enc, num_layers, pool, skip):
    x_ref = refs[0]
    o_ref = refs[-1]
    w_refs = refs[1:-1]              # flat (w, b, w, b, ...) refs

    x = x_ref[...]                    # (TB, S, Dp_in)
    tb, s, _ = x.shape
    h = x.astype(jnp.float32)         # activations kept 3-D, f32 tail math

    def matmul(a3, w):
        # 2-D MXU matmul with f32 accumulation. The reshapes are layout no-ops
        # whenever S % 8 == 0 (they never cross an (8, 128) tile boundary).
        hd = a3.shape[-1]
        r = jnp.dot(a3.reshape(tb * s, hd).astype(w.dtype), w,
                    preferred_element_type=jnp.float32)
        return r.reshape(tb, s, w.shape[1])

    idx = 0
    if has_enc:
        w, b = w_refs[idx][...], w_refs[idx + 1][...]
        idx += 2
        h = jnp.maximum(matmul(h, w) + b, 0.0)      # bias + ReLU, f32
        # TODO(synk): Dropout evaluated in inference mode (identity).

    inv_s = 1.0 / s
    for _ in range(num_layers):
        w1, b1 = w_refs[idx][...], w_refs[idx + 1][...]
        w2, b2 = w_refs[idx + 2][...], w_refs[idx + 3][...]
        idx += 4

        # local (per-element) branch: one (TB*S, H) @ (H, H) matmul
        local = matmul(h, w1) + b1                  # (TB, S, Hp)

        # pooled (per-set) branch
        pooled = h.sum(axis=1)                      # (TB, Hp), f32
        if pool == "mean":
            pooled = pooled * inv_s
        glob = jnp.dot(pooled.astype(w2.dtype), w2,
                       preferred_element_type=jnp.float32) + b2   # (TB, Hp)

        # ReLU fused; residual AFTER activation (matches reference ordering)
        y = jnp.maximum(local + glob[:, None, :], 0.0)
        h = h + y if skip else y                    # f32 elementwise

    wd, bd = w_refs[idx][...], w_refs[idx + 1][...]
    out = matmul(h, wd) + bd                        # (TB, S, Dp_out), lane-dense
    o_ref[...] = out.astype(o_ref.dtype)


# ----------------------------------------------------------------------------
# Wrapper: one pallas_call for the whole forward pass
# ----------------------------------------------------------------------------
def _vmem_capacity_bytes():
    try:
        info = pltpu.get_tpu_info()
        cap = int(getattr(info, "vmem_capacity_bytes", 0))
        if cap > 0:
            return cap
    except Exception:
        pass
    return 64 * 1024 * 1024          # conservative default: v7x physical VMEM


def deepsets_forward(x, prepared, *, skip_com=True, pool="mean", max_rows=4096):
    B, S, in_dim = x.shape
    assert in_dim == prepared["in_dim"], (in_dim, prepared["in_dim"])
    flat = list(prepared["flat"])
    dpi, hp, dpo = prepared["in_dim_p"], prepared["hidden_p"], prepared["out_dim_p"]
    out_dim = prepared["out_dim"]

    # ---- generation-aware VMEM budget -> tile_b ------------------------------
    cap = _vmem_capacity_bytes()
    vmem_limit = min(int(cap * 3 // 4), 100 * 1024 * 1024)  # ~48 MiB v7x, ~96 MiB v5e/v6e
    weight_bytes = sum(int(a.size) * a.dtype.itemsize for a in flat)
    # per-set live bytes: 2x input + 2x output block (double-buffered) plus
    # ~6 f32 (S, Hp)-sized live intermediates (h, local, y, bf16 casts, slack).
    per_set = S * (2 * dpi * 4 + 2 * dpo * 4 + 6 * hp * 4)
    budget = vmem_limit - weight_bytes - 4 * 1024 * 1024     # Mosaic scratch slack
    tile_b = max(1, budget // max(per_set, 1))
    tile_b = int(min(tile_b, max(1, max_rows // max(S, 1)), B))

    # ---- grid sizing: >= 2 (even) steps so both v7x TensorCores get work -----
    num_steps = -(-B // tile_b)
    if B >= 2 and num_steps < 2:
        num_steps = 2
        tile_b = -(-B // num_steps)
    if num_steps > 1 and num_steps % 2:
        num_steps += 1
        tile_b = -(-B // num_steps)
    b_pad = num_steps * tile_b

    # ---- pad input once in the wrapper (zero lanes/sets stay inert because
    #      all padded weight rows/cols and biases are zero) --------------------
    xp = x
    if b_pad != B or dpi != in_dim:
        xp = jnp.pad(x, ((0, b_pad - B), (0, 0), (0, dpi - in_dim)))

    kern = functools.partial(
        _fused_deepsets_kernel,
        has_enc=prepared["has_enc"], num_layers=prepared["num_layers"],
        pool=pool, skip=skip_com)

    def run(buffered):
        if buffered:
            def wspec(shp):
                return pl.BlockSpec(shp, lambda i: (0, 0),
                                    pipeline_mode=pl.Buffered(1))
        else:
            def wspec(shp):
                return pl.BlockSpec(shp, lambda i: (0, 0))
        in_specs = [pl.BlockSpec((tile_b, S, dpi), lambda i: (i, 0, 0))]
        in_specs += [wspec(a.shape) for a in flat]
        return pl.pallas_call(
            kern,
            out_shape=jax.ShapeDtypeStruct((b_pad, S, dpo), x.dtype),
            grid=(num_steps,),
            in_specs=in_specs,
            out_specs=pl.BlockSpec((tile_b, S, dpo), lambda i: (i, 0, 0)),
            compiler_params=pltpu.CompilerParams(
                dimension_semantics=("parallel",),
                vmem_limit_bytes=vmem_limit),
        )(xp, *flat)

    try:
        out = run(buffered=True)     # constant weight blocks: single VMEM buffer
    except Exception:
        out = run(buffered=False)    # fallback if Buffered(1) is not accepted

    return out[:B, :, :out_dim]


# ----------------------------------------------------------------------------
# Parameter init (deterministic, torch.nn.Linear-style uniform bounds)
# ----------------------------------------------------------------------------
def _init_linear(key, fan_in, fan_out, dtype=jnp.float32):
    kw, kb = jax.random.split(key)
    bound = 1.0 / (fan_in ** 0.5)
    w = jax.random.uniform(kw, (fan_in, fan_out), dtype, -bound, bound)
    b = jax.random.uniform(kb, (1, fan_out), dtype, -bound, bound)
    return w, b


def init_deepsets_params(key, in_dim, hidden_dim, out_dim, num_layers):
    params = {}
    keys = jax.random.split(key, 2 * num_layers + 2)
    if in_dim != hidden_dim:
        params["enc"] = _init_linear(keys[0], in_dim, hidden_dim)
    layers = []
    for l in range(num_layers):
        w1, b1 = _init_linear(keys[1 + 2 * l], hidden_dim, hidden_dim)
        w2, b2 = _init_linear(keys[2 + 2 * l], hidden_dim, hidden_dim)
        layers.append((w1, b1, w2, b2))
    params["layers"] = layers
    params["dec"] = _init_linear(keys[-1], hidden_dim, out_dim)
    return params


# ----------------------------------------------------------------------------
# Pure-JAX reference (f32) for a correctness sanity check
# ----------------------------------------------------------------------------
def deepsets_reference(x, params, *, skip_com=True, pool="mean"):
    def linear(h, w, b):
        return jnp.einsum("bsd,de->bse", h, w) + b

    h = x.astype(jnp.float32)
    if "enc" in params:
        w, b = params["enc"]
        h = jax.nn.relu(linear(h, w, b))
    for (w1, b1, w2, b2) in params["layers"]:
        local = linear(h, w1, b1)
        pooled = h.sum(axis=1, keepdims=True)
        if pool == "mean":
            pooled = pooled / h.shape[1]
        glob = jnp.einsum("bsd,de->bse", pooled, w2) + b2
        y = jax.nn.relu(local + glob)
        h = h + y if skip_com else y
    w, b = params["dec"]
    return linear(h, w, b)


# ----------------------------------------------------------------------------
# Demo
# ----------------------------------------------------------------------------
if __name__ == "__main__":
    B, S = 2, 8                  # batch of sets, elements per set
    in_dim, hidden_dim, out_dim = 4, 32, 16
    num_layers = 2

    key = jax.random.PRNGKey(0)
    kx, kp = jax.random.split(key)
    x = jax.random.normal(kx, (B, S, in_dim), dtype=jnp.float32)

    params = init_deepsets_params(kp, in_dim, hidden_dim, out_dim, num_layers)
    prepared = prepare_deepsets_params(params)   # pad to 128 lanes + bf16, once

    out = deepsets_forward(x, prepared, skip_com=True, pool="mean")
    out = jax.block_until_ready(out)
    assert out.shape == (B, S, out_dim), out.shape

    # Sanity check vs. f32 reference (kernel matmuls run in bf16 -> loose tol).
    ref = deepsets_reference(x, params, skip_com=True, pool="mean")
    max_err = float(jnp.max(jnp.abs(out.astype(jnp.float32) - ref)))
    assert max_err < 0.1, f"max abs error vs reference too large: {max_err}"

    print("KERNEL_OK")
</pallas_src>

<mosaic_0001>
module attributes {stable_mosaic.version = 11 : i64} {
  func.func @_fused_deepsets_kernel(%arg0: i32, %arg1: memref<1x8x128xf32, #tpu.memory_space<vmem>>, %arg2: memref<128x128xbf16, #tpu.memory_space<vmem>>, %arg3: memref<1x128xf32, #tpu.memory_space<vmem>>, %arg4: memref<128x128xbf16, #tpu.memory_space<vmem>>, %arg5: memref<1x128xf32, #tpu.memory_space<vmem>>, %arg6: memref<128x128xbf16, #tpu.memory_space<vmem>>, %arg7: memref<1x128xf32, #tpu.memory_space<vmem>>, %arg8: memref<128x128xbf16, #tpu.memory_space<vmem>>, %arg9: memref<1x128xf32, #tpu.memory_space<vmem>>, %arg10: memref<128x128xbf16, #tpu.memory_space<vmem>>, %arg11: memref<1x128xf32, #tpu.memory_space<vmem>>, %arg12: memref<128x128xbf16, #tpu.memory_space<vmem>>, %arg13: memref<1x128xf32, #tpu.memory_space<vmem>>, %arg14: memref<1x8x128xf32, #tpu.memory_space<vmem>>) attributes {dimension_semantics = [#tpu.dimension_semantics<parallel>], iteration_bounds = array<i64: 2>, scalar_prefetch = 0 : i64, scratch_operands = 0 : i64, tpu.core_type = #tpu.core_type<tc>, window_params = [{transform_indices = @transform_0, window_bounds = array<i64: 1, 8, 128>}, {pipeline_mode = #tpu.pipeline_mode<synchronous>, transform_indices = @transform_1, window_bounds = array<i64: 128, 128>}, {pipeline_mode = #tpu.pipeline_mode<synchronous>, transform_indices = @transform_2, window_bounds = array<i64: 1, 128>}, {pipeline_mode = #tpu.pipeline_mode<synchronous>, transform_indices = @transform_3, window_bounds = array<i64: 128, 128>}, {pipeline_mode = #tpu.pipeline_mode<synchronous>, transform_indices = @transform_4, window_bounds = array<i64: 1, 128>}, {pipeline_mode = #tpu.pipeline_mode<synchronous>, transform_indices = @transform_5, window_bounds = array<i64: 128, 128>}, {pipeline_mode = #tpu.pipeline_mode<synchronous>, transform_indices = @transform_6, window_bounds = array<i64: 1, 128>}, {pipeline_mode = #tpu.pipeline_mode<synchronous>, transform_indices = @transform_7, window_bounds = array<i64: 128, 128>}, {pipeline_mode = #tpu.pipeline_mode<synchronous>, transform_indices = @transform_8, window_bounds = array<i64: 1, 128>}, {pipeline_mode = #tpu.pipeline_mode<synchronous>, transform_indices = @transform_9, window_bounds = array<i64: 128, 128>}, {pipeline_mode = #tpu.pipeline_mode<synchronous>, transform_indices = @transform_10, window_bounds = array<i64: 1, 128>}, {pipeline_mode = #tpu.pipeline_mode<synchronous>, transform_indices = @transform_11, window_bounds = array<i64: 128, 128>}, {pipeline_mode = #tpu.pipeline_mode<synchronous>, transform_indices = @transform_12, window_bounds = array<i64: 1, 128>}, {transform_indices = @transform_13, window_bounds = array<i64: 1, 8, 128>}]} {
    %c0 = arith.constant 0 : index
    %c0_0 = arith.constant 0 : index
    %c0_1 = arith.constant 0 : index
    %0 = vector.load %arg1[%c0, %c0_0, %c0_1] : memref<1x8x128xf32, #tpu.memory_space<vmem>>, vector<1x8x128xf32>
    %c0_2 = arith.constant 0 : index
    %c0_3 = arith.constant 0 : index
    %1 = vector.load %arg2[%c0_2, %c0_3] : memref<128x128xbf16, #tpu.memory_space<vmem>>, vector<128x128xbf16>
    %c0_4 = arith.constant 0 : index
    %c0_5 = arith.constant 0 : index
    %2 = vector.load %arg3[%c0_4, %c0_5] : memref<1x128xf32, #tpu.memory_space<vmem>>, vector<1x128xf32>
    %3 = vector.shape_cast %0 : vector<1x8x128xf32> to vector<8x128xf32>
    %4 = arith.truncf %3 : vector<8x128xf32> to vector<8x128xbf16>
    %cst = arith.constant dense<0.000000e+00> : vector<8x128xf32>
    %5 = tpu.matmul %4, %1, %cst {dimension_numbers = #tpu.dot_dimension_numbers<[1], [0], [0], [1], [0, 0, 1, 1], [], []>} : vector<8x128xbf16>, vector<128x128xbf16>, vector<8x128xf32> -> vector<8x128xf32>
    %6 = vector.shape_cast %5 : vector<8x128xf32> to vector<1x8x128xf32>
    %7 = vector.shape_cast %2 : vector<1x128xf32> to vector<1x1x128xf32>
    %8 = vector.broadcast %7 : vector<1x1x128xf32> to vector<1x8x128xf32>
    %9 = arith.addf %6, %8 : vector<1x8x128xf32>
    %cst_6 = arith.constant 0.000000e+00 : f32
    %10 = vector.broadcast %cst_6 : f32 to vector<1x8x128xf32>
    %11 = arith.maximumf %9, %10 : vector<1x8x128xf32>
    %c0_7 = arith.constant 0 : index
    %c0_8 = arith.constant 0 : index
    %12 = vector.load %arg4[%c0_7, %c0_8] : memref<128x128xbf16, #tpu.memory_space<vmem>>, vector<128x128xbf16>
    %c0_9 = arith.constant 0 : index
    %c0_10 = arith.constant 0 : index
    %13 = vector.load %arg5[%c0_9, %c0_10] : memref<1x128xf32, #tpu.memory_space<vmem>>, vector<1x128xf32>
    %c0_11 = arith.constant 0 : index
    %c0_12 = arith.constant 0 : index
    %14 = vector.load %arg6[%c0_11, %c0_12] : memref<128x128xbf16, #tpu.memory_space<vmem>>, vector<128x128xbf16>
    %c0_13 = arith.constant 0 : index
    %c0_14 = arith.constant 0 : index
    %15 = vector.load %arg7[%c0_13, %c0_14] : memref<1x128xf32, #tpu.memory_space<vmem>>, vector<1x128xf32>
    %16 = vector.shape_cast %11 : vector<1x8x128xf32> to vector<8x128xf32>
    %17 = arith.truncf %16 : vector<8x128xf32> to vector<8x128xbf16>
    %cst_15 = arith.constant dense<0.000000e+00> : vector<8x128xf32>
    %18 = tpu.matmul %17, %12, %cst_15 {dimension_numbers = #tpu.dot_dimension_numbers<[1], [0], [0], [1], [0, 0, 1, 1], [], []>} : vector<8x128xbf16>, vector<128x128xbf16>, vector<8x128xf32> -> vector<8x128xf32>
    %19 = vector.shape_cast %18 : vector<8x128xf32> to vector<1x8x128xf32>
    %20 = vector.shape_cast %13 : vector<1x128xf32> to vector<1x1x128xf32>
    %21 = vector.broadcast %20 : vector<1x1x128xf32> to vector<1x8x128xf32>
    %22 = arith.addf %19, %21 : vector<1x8x128xf32>
    %cst_16 = arith.constant dense<0.000000e+00> : vector<1x128xf32>
    %23 = vector.multi_reduction <add>, %11, %cst_16 [1] : vector<1x8x128xf32> to vector<1x128xf32>
    %cst_17 = arith.constant 1.250000e-01 : f32
    %24 = vector.broadcast %cst_17 : f32 to vector<1x128xf32>
    %25 = arith.mulf %23, %24 : vector<1x128xf32>
    %26 = arith.truncf %25 : vector<1x128xf32> to vector<1x128xbf16>
    %cst_18 = arith.constant dense<0.000000e+00> : vector<1x128xf32>
    %27 = tpu.matmul %26, %14, %cst_18 {dimension_numbers = #tpu.dot_dimension_numbers<[1], [0], [0], [1], [0, 0, 1, 1], [], []>} : vector<1x128xbf16>, vector<128x128xbf16>, vector<1x128xf32> -> vector<1x128xf32>
    %28 = arith.addf %27, %15 : vector<1x128xf32>
    %29 = vector.shape_cast %28 : vector<1x128xf32> to vector<1x1x128xf32>
    %30 = vector.broadcast %29 : vector<1x1x128xf32> to vector<1x8x128xf32>
    %31 = arith.addf %22, %30 : vector<1x8x128xf32>
    %cst_19 = arith.constant 0.000000e+00 : f32
    %32 = vector.broadcast %cst_19 : f32 to vector<1x8x128xf32>
    %33 = arith.maximumf %31, %32 : vector<1x8x128xf32>
    %34 = arith.addf %11, %33 : vector<1x8x128xf32>
    %c0_20 = arith.constant 0 : index
    %c0_21 = arith.constant 0 : index
    %35 = vector.load %arg8[%c0_20, %c0_21] : memref<128x128xbf16, #tpu.memory_space<vmem>>, vector<128x128xbf16>
    %c0_22 = arith.constant 0 : index
    %c0_23 = arith.constant 0 : index
    %36 = vector.load %arg9[%c0_22, %c0_23] : memref<1x128xf32, #tpu.memory_space<vmem>>, vector<1x128xf32>
    %c0_24 = arith.constant 0 : index
    %c0_25 = arith.constant 0 : index
    %37 = vector.load %arg10[%c0_24, %c0_25] : memref<128x128xbf16, #tpu.memory_space<vmem>>, vector<128x128xbf16>
    %c0_26 = arith.constant 0 : index
    %c0_27 = arith.constant 0 : index
    %38 = vector.load %arg11[%c0_26, %c0_27] : memref<1x128xf32, #tpu.memory_space<vmem>>, vector<1x128xf32>
    %39 = vector.shape_cast %34 : vector<1x8x128xf32> to vector<8x128xf32>
    %40 = arith.truncf %39 : vector<8x128xf32> to vector<8x128xbf16>
    %cst_28 = arith.constant dense<0.000000e+00> : vector<8x128xf32>
    %41 = tpu.matmul %40, %35, %cst_28 {dimension_numbers = #tpu.dot_dimension_numbers<[1], [0], [0], [1], [0, 0, 1, 1], [], []>} : vector<8x128xbf16>, vector<128x128xbf16>, vector<8x128xf32> -> vector<8x128xf32>
    %42 = vector.shape_cast %41 : vector<8x128xf32> to vector<1x8x128xf32>
    %43 = vector.shape_cast %36 : vector<1x128xf32> to vector<1x1x128xf32>
    %44 = vector.broadcast %43 : vector<1x1x128xf32> to vector<1x8x128xf32>
    %45 = arith.addf %42, %44 : vector<1x8x128xf32>
    %cst_29 = arith.constant dense<0.000000e+00> : vector<1x128xf32>
    %46 = vector.multi_reduction <add>, %34, %cst_29 [1] : vector<1x8x128xf32> to vector<1x128xf32>
    %cst_30 = arith.constant 1.250000e-01 : f32
    %47 = vector.broadcast %cst_30 : f32 to vector<1x128xf32>
    %48 = arith.mulf %46, %47 : vector<1x128xf32>
    %49 = arith.truncf %48 : vector<1x128xf32> to vector<1x128xbf16>
    %cst_31 = arith.constant dense<0.000000e+00> : vector<1x128xf32>
    %50 = tpu.matmul %49, %37, %cst_31 {dimension_numbers = #tpu.dot_dimension_numbers<[1], [0], [0], [1], [0, 0, 1, 1], [], []>} : vector<1x128xbf16>, vector<128x128xbf16>, vector<1x128xf32> -> vector<1x128xf32>
    %51 = arith.addf %50, %38 : vector<1x128xf32>
    %52 = vector.shape_cast %51 : vector<1x128xf32> to vector<1x1x128xf32>
    %53 = vector.broadcast %52 : vector<1x1x128xf32> to vector<1x8x128xf32>
    %54 = arith.addf %45, %53 : vector<1x8x128xf32>
    %cst_32 = arith.constant 0.000000e+00 : f32
    %55 = vector.broadcast %cst_32 : f32 to vector<1x8x128xf32>
    %56 = arith.maximumf %54, %55 : vector<1x8x128xf32>
    %57 = arith.addf %34, %56 : vector<1x8x128xf32>
    %c0_33 = arith.constant 0 : index
    %c0_34 = arith.constant 0 : index
    %58 = vector.load %arg12[%c0_33, %c0_34] : memref<128x128xbf16, #tpu.memory_space<vmem>>, vector<128x128xbf16>
    %c0_35 = arith.constant 0 : index
    %c0_36 = arith.constant 0 : index
    %59 = vector.load %arg13[%c0_35, %c0_36] : memref<1x128xf32, #tpu.memory_space<vmem>>, vector<1x128xf32>
    %60 = vector.shape_cast %57 : vector<1x8x128xf32> to vector<8x128xf32>
    %61 = arith.truncf %60 : vector<8x128xf32> to vector<8x128xbf16>
    %cst_37 = arith.constant dense<0.000000e+00> : vector<8x128xf32>
    %62 = tpu.matmul %61, %58, %cst_37 {dimension_numbers = #tpu.dot_dimension_numbers<[1], [0], [0], [1], [0, 0, 1, 1], [], []>} : vector<8x128xbf16>, vector<128x128xbf16>, vector<8x128xf32> -> vector<8x128xf32>
    %63 = vector.shape_cast %62 : vector<8x128xf32> to vector<1x8x128xf32>
    %64 = vector.shape_cast %59 : vector<1x128xf32> to vector<1x1x128xf32>
    %65 = vector.broadcast %64 : vector<1x1x128xf32> to vector<1x8x128xf32>
    %66 = arith.addf %63, %65 : vector<1x8x128xf32>
    %c0_38 = arith.constant 0 : index
    %c0_39 = arith.constant 0 : index
    %c0_40 = arith.constant 0 : index
    %67 = vector.load %arg14[%c0_38, %c0_39, %c0_40] : memref<1x8x128xf32, #tpu.memory_space<vmem>>, vector<1x8x128xf32>
    tpu.vector_store %arg14[%c0_38, %c0_39, %c0_40], %66 {strides = array<i32>} : memref<1x8x128xf32, #tpu.memory_space<vmem>>, vector<1x8x128xf32>,
    return
  }
  func.func @transform_0(%arg0: i32) -> (i32, i32, i32) {
    %c0_i32 = arith.constant 0 : i32
    %c0_i32_0 = arith.constant 0 : i32
    %c0_i32_1 = arith.constant 0 : i32
    return %arg0, %c0_i32, %c0_i32_0 : i32, i32, i32
  }
  func.func @transform_1(%arg0: i32) -> (i32, i32) {
    %c0_i32 = arith.constant 0 : i32
    %c0_i32_0 = arith.constant 0 : i32
    %c0_i32_1 = arith.constant 0 : i32
    return %c0_i32, %c0_i32_0 : i32, i32
  }
  func.func @transform_2(%arg0: i32) -> (i32, i32) {
    %c0_i32 = arith.constant 0 : i32
    %c0_i32_0 = arith.constant 0 : i32
    %c0_i32_1 = arith.constant 0 : i32
    return %c0_i32, %c0_i32_0 : i32, i32
  }
  func.func @transform_3(%arg0: i32) -> (i32, i32) {
    %c0_i32 = arith.constant 0 : i32
    %c0_i32_0 = arith.constant 0 : i32
    %c0_i32_1 = arith.constant 0 : i32
    return %c0_i32, %c0_i32_0 : i32, i32
  }
  func.func @transform_4(%arg0: i32) -> (i32, i32) {
    %c0_i32 = arith.constant 0 : i32
    %c0_i32_0 = arith.constant 0 : i32
    %c0_i32_1 = arith.constant 0 : i32
    return %c0_i32, %c0_i32_0 : i32, i32
  }
  func.func @transform_5(%arg0: i32) -> (i32, i32) {
    %c0_i32 = arith.constant 0 : i32
    %c0_i32_0 = arith.constant 0 : i32
    %c0_i32_1 = arith.constant 0 : i32
    return %c0_i32, %c0_i32_0 : i32, i32
  }
  func.func @transform_6(%arg0: i32) -> (i32, i32) {
    %c0_i32 = arith.constant 0 : i32
    %c0_i32_0 = arith.constant 0 : i32
    %c0_i32_1 = arith.constant 0 : i32
    return %c0_i32, %c0_i32_0 : i32, i32
  }
  func.func @transform_7(%arg0: i32) -> (i32, i32) {
    %c0_i32 = arith.constant 0 : i32
    %c0_i32_0 = arith.constant 0 : i32
    %c0_i32_1 = arith.constant 0 : i32
    return %c0_i32, %c0_i32_0 : i32, i32
  }
  func.func @transform_8(%arg0: i32) -> (i32, i32) {
    %c0_i32 = arith.constant 0 : i32
    %c0_i32_0 = arith.constant 0 : i32
    %c0_i32_1 = arith.constant 0 : i32
    return %c0_i32, %c0_i32_0 : i32, i32
  }
  func.func @transform_9(%arg0: i32) -> (i32, i32) {
    %c0_i32 = arith.constant 0 : i32
    %c0_i32_0 = arith.constant 0 : i32
    %c0_i32_1 = arith.constant 0 : i32
    return %c0_i32, %c0_i32_0 : i32, i32
  }
  func.func @transform_10(%arg0: i32) -> (i32, i32) {
    %c0_i32 = arith.constant 0 : i32
    %c0_i32_0 = arith.constant 0 : i32
    %c0_i32_1 = arith.constant 0 : i32
    return %c0_i32, %c0_i32_0 : i32, i32
  }
  func.func @transform_11(%arg0: i32) -> (i32, i32) {
    %c0_i32 = arith.constant 0 : i32
    %c0_i32_0 = arith.constant 0 : i32
    %c0_i32_1 = arith.constant 0 : i32
    return %c0_i32, %c0_i32_0 : i32, i32
  }
  func.func @transform_12(%arg0: i32) -> (i32, i32) {
    %c0_i32 = arith.constant 0 : i32
    %c0_i32_0 = arith.constant 0 : i32
    %c0_i32_1 = arith.constant 0 : i32
    return %c0_i32, %c0_i32_0 : i32, i32
  }
  func.func @transform_13(%arg0: i32) -> (i32, i32, i32) {
    %c0_i32 = arith.constant 0 : i32
    %c0_i32_0 = arith.constant 0 : i32
    %c0_i32_1 = arith.constant 0 : i32
    return %arg0, %c0_i32, %c0_i32_0 : i32, i32, i32
  }
}

module attributes {stable_mosaic.version = 11 : i64} {
  func.func @_fused_deepsets_kernel(%arg0: i32, %arg1: memref<1x8x128xf32, #tpu.memory_space<vmem>>, %arg2: memref<128x128xbf16, #tpu.memory_space<vmem>>, %arg3: memref<1x128xf32, #tpu.memory_space<vmem>>, %arg4: memref<128x128xbf16, #tpu.memory_space<vmem>>, %arg5: memref<1x128xf32, #tpu.memory_space<vmem>>, %arg6: memref<128x128xbf16, #tpu.memory_space<vmem>>, %arg7: memref<1x128xf32, #tpu.memory_space<vmem>>, %arg8: memref<128x128xbf16, #tpu.memory_space<vmem>>, %arg9: memref<1x128xf32, #tpu.memory_space<vmem>>, %arg10: memref<128x128xbf16, #tpu.memory_space<vmem>>, %arg11: memref<1x128xf32, #tpu.memory_space<vmem>>, %arg12: memref<128x128xbf16, #tpu.memory_space<vmem>>, %arg13: memref<1x128xf32, #tpu.memory_space<vmem>>, %arg14: memref<1x8x128xf32, #tpu.memory_space<vmem>>) attributes {dimension_semantics = [#tpu.dimension_semantics<parallel>], iteration_bounds = array<i64: 2>, scalar_prefetch = 0 : i64, scratch_operands = 0 : i64, tpu.core_type = #tpu.core_type<tc>, window_params = [{transform_indices = @transform_0, window_bounds = array<i64: 1, 8, 128>}, {pipeline_mode = #tpu.pipeline_mode<synchronous>, transform_indices = @transform_1, window_bounds = array<i64: 128, 128>}, {pipeline_mode = #tpu.pipeline_mode<synchronous>, transform_indices = @transform_2, window_bounds = array<i64: 1, 128>}, {pipeline_mode = #tpu.pipeline_mode<synchronous>, transform_indices = @transform_3, window_bounds = array<i64: 128, 128>}, {pipeline_mode = #tpu.pipeline_mode<synchronous>, transform_indices = @transform_4, window_bounds = array<i64: 1, 128>}, {pipeline_mode = #tpu.pipeline_mode<synchronous>, transform_indices = @transform_5, window_bounds = array<i64: 128, 128>}, {pipeline_mode = #tpu.pipeline_mode<synchronous>, transform_indices = @transform_6, window_bounds = array<i64: 1, 128>}, {pipeline_mode = #tpu.pipeline_mode<synchronous>, transform_indices = @transform_7, window_bounds = array<i64: 128, 128>}, {pipeline_mode = #tpu.pipeline_mode<synchronous>, transform_indices = @transform_8, window_bounds = array<i64: 1, 128>}, {pipeline_mode = #tpu.pipeline_mode<synchronous>, transform_indices = @transform_9, window_bounds = array<i64: 128, 128>}, {pipeline_mode = #tpu.pipeline_mode<synchronous>, transform_indices = @transform_10, window_bounds = array<i64: 1, 128>}, {pipeline_mode = #tpu.pipeline_mode<synchronous>, transform_indices = @transform_11, window_bounds = array<i64: 128, 128>}, {pipeline_mode = #tpu.pipeline_mode<synchronous>, transform_indices = @transform_12, window_bounds = array<i64: 1, 128>}, {transform_indices = @transform_13, window_bounds = array<i64: 1, 8, 128>}]} {
    %c0 = arith.constant 0 : index
    %c0_0 = arith.constant 0 : index
    %c0_1 = arith.constant 0 : index
    %0 = vector.load %arg1[%c0, %c0_0, %c0_1] : memref<1x8x128xf32, #tpu.memory_space<vmem>>, vector<1x8x128xf32>
    %c0_2 = arith.constant 0 : index
    %c0_3 = arith.constant 0 : index
    %1 = vector.load %arg2[%c0_2, %c0_3] : memref<128x128xbf16, #tpu.memory_space<vmem>>, vector<128x128xbf16>
    %c0_4 = arith.constant 0 : index
    %c0_5 = arith.constant 0 : index
    %2 = vector.load %arg3[%c0_4, %c0_5] : memref<1x128xf32, #tpu.memory_space<vmem>>, vector<1x128xf32>
    %3 = vector.shape_cast %0 : vector<1x8x128xf32> to vector<8x128xf32>
    %4 = arith.truncf %3 : vector<8x128xf32> to vector<8x128xbf16>
    %cst = arith.constant dense<0.000000e+00> : vector<8x128xf32>
    %5 = tpu.matmul %4, %1, %cst {dimension_numbers = #tpu.dot_dimension_numbers<[1], [0], [0], [1], [0, 0, 1, 1], [], []>} : vector<8x128xbf16>, vector<128x128xbf16>, vector<8x128xf32> -> vector<8x128xf32>
    %6 = vector.shape_cast %5 : vector<8x128xf32> to vector<1x8x128xf32>
    %7 = vector.shape_cast %2 : vector<1x128xf32> to vector<1x1x128xf32>
    %8 = vector.broadcast %7 : vector<1x1x128xf32> to vector<1x8x128xf32>
    %9 = arith.addf %6, %8 : vector<1x8x128xf32>
    %cst_6 = arith.constant 0.000000e+00 : f32
    %10 = vector.broadcast %cst_6 : f32 to vector<1x8x128xf32>
    %11 = arith.maximumf %9, %10 : vector<1x8x128xf32>
    %c0_7 = arith.constant 0 : index
    %c0_8 = arith.constant 0 : index
    %12 = vector.load %arg4[%c0_7, %c0_8] : memref<128x128xbf16, #tpu.memory_space<vmem>>, vector<128x128xbf16>
    %c0_9 = arith.constant 0 : index
    %c0_10 = arith.constant 0 : index
    %13 = vector.load %arg5[%c0_9, %c0_10] : memref<1x128xf32, #tpu.memory_space<vmem>>, vector<1x128xf32>
    %c0_11 = arith.constant 0 : index
    %c0_12 = arith.constant 0 : index
    %14 = vector.load %arg6[%c0_11, %c0_12] : memref<128x128xbf16, #tpu.memory_space<vmem>>, vector<128x128xbf16>
    %c0_13 = arith.constant 0 : index
    %c0_14 = arith.constant 0 : index
    %15 = vector.load %arg7[%c0_13, %c0_14] : memref<1x128xf32, #tpu.memory_space<vmem>>, vector<1x128xf32>
    %16 = vector.shape_cast %11 : vector<1x8x128xf32> to vector<8x128xf32>
    %17 = arith.truncf %16 : vector<8x128xf32> to vector<8x128xbf16>
    %cst_15 = arith.constant dense<0.000000e+00> : vector<8x128xf32>
    %18 = tpu.matmul %17, %12, %cst_15 {dimension_numbers = #tpu.dot_dimension_numbers<[1], [0], [0], [1], [0, 0, 1, 1], [], []>} : vector<8x128xbf16>, vector<128x128xbf16>, vector<8x128xf32> -> vector<8x128xf32>
    %19 = vector.shape_cast %18 : vector<8x128xf32> to vector<1x8x128xf32>
    %20 = vector.shape_cast %13 : vector<1x128xf32> to vector<1x1x128xf32>
    %21 = vector.broadcast %20 : vector<1x1x128xf32> to vector<1x8x128xf32>
    %22 = arith.addf %19, %21 : vector<1x8x128xf32>
    %cst_16 = arith.constant dense<0.000000e+00> : vector<1x128xf32>
    %23 = vector.multi_reduction <add>, %11, %cst_16 [1] : vector<1x8x128xf32> to vector<1x128xf32>
    %cst_17 = arith.constant 1.250000e-01 : f32
    %24 = vector.broadcast %cst_17 : f32 to vector<1x128xf32>
    %25 = arith.mulf %23, %24 : vector<1x128xf32>
    %26 = arith.truncf %25 : vector<1x128xf32> to vector<1x128xbf16>
    %cst_18 = arith.constant dense<0.000000e+00> : vector<1x128xf32>
    %27 = tpu.matmul %26, %14, %cst_18 {dimension_numbers = #tpu.dot_dimension_numbers<[1], [0], [0], [1], [0, 0, 1, 1], [], []>} : vector<1x128xbf16>, vector<128x128xbf16>, vector<1x128xf32> -> vector<1x128xf32>
    %28 = arith.addf %27, %15 : vector<1x128xf32>
    %29 = vector.shape_cast %28 : vector<1x128xf32> to vector<1x1x128xf32>
    %30 = vector.broadcast %29 : vector<1x1x128xf32> to vector<1x8x128xf32>
    %31 = arith.addf %22, %30 : vector<1x8x128xf32>
    %cst_19 = arith.constant 0.000000e+00 : f32
    %32 = vector.broadcast %cst_19 : f32 to vector<1x8x128xf32>
    %33 = arith.maximumf %31, %32 : vector<1x8x128xf32>
    %34 = arith.addf %11, %33 : vector<1x8x128xf32>
    %c0_20 = arith.constant 0 : index
    %c0_21 = arith.constant 0 : index
    %35 = vector.load %arg8[%c0_20, %c0_21] : memref<128x128xbf16, #tpu.memory_space<vmem>>, vector<128x128xbf16>
    %c0_22 = arith.constant 0 : index
    %c0_23 = arith.constant 0 : index
    %36 = vector.load %arg9[%c0_22, %c0_23] : memref<1x128xf32, #tpu.memory_space<vmem>>, vector<1x128xf32>
    %c0_24 = arith.constant 0 : index
    %c0_25 = arith.constant 0 : index
    %37 = vector.load %arg10[%c0_24, %c0_25] : memref<128x128xbf16, #tpu.memory_space<vmem>>, vector<128x128xbf16>
    %c0_26 = arith.constant 0 : index
    %c0_27 = arith.constant 0 : index
    %38 = vector.load %arg11[%c0_26, %c0_27] : memref<1x128xf32, #tpu.memory_space<vmem>>, vector<1x128xf32>
    %39 = vector.shape_cast %34 : vector<1x8x128xf32> to vector<8x128xf32>
    %40 = arith.truncf %39 : vector<8x128xf32> to vector<8x128xbf16>
    %cst_28 = arith.constant dense<0.000000e+00> : vector<8x128xf32>
    %41 = tpu.matmul %40, %35, %cst_28 {dimension_numbers = #tpu.dot_dimension_numbers<[1], [0], [0], [1], [0, 0, 1, 1], [], []>} : vector<8x128xbf16>, vector<128x128xbf16>, vector<8x128xf32> -> vector<8x128xf32>
    %42 = vector.shape_cast %41 : vector<8x128xf32> to vector<1x8x128xf32>
    %43 = vector.shape_cast %36 : vector<1x128xf32> to vector<1x1x128xf32>
    %44 = vector.broadcast %43 : vector<1x1x128xf32> to vector<1x8x128xf32>
    %45 = arith.addf %42, %44 : vector<1x8x128xf32>
    %cst_29 = arith.constant dense<0.000000e+00> : vector<1x128xf32>
    %46 = vector.multi_reduction <add>, %34, %cst_29 [1] : vector<1x8x128xf32> to vector<1x128xf32>
    %cst_30 = arith.constant 1.250000e-01 : f32
    %47 = vector.broadcast %cst_30 : f32 to vector<1x128xf32>
    %48 = arith.mulf %46, %47 : vector<1x128xf32>
    %49 = arith.truncf %48 : vector<1x128xf32> to vector<1x128xbf16>
    %cst_31 = arith.constant dense<0.000000e+00> : vector<1x128xf32>
    %50 = tpu.matmul %49, %37, %cst_31 {dimension_numbers = #tpu.dot_dimension_numbers<[1], [0], [0], [1], [0, 0, 1, 1], [], []>} : vector<1x128xbf16>, vector<128x128xbf16>, vector<1x128xf32> -> vector<1x128xf32>
    %51 = arith.addf %50, %38 : vector<1x128xf32>
    %52 = vector.shape_cast %51 : vector<1x128xf32> to vector<1x1x128xf32>
    %53 = vector.broadcast %52 : vector<1x1x128xf32> to vector<1x8x128xf32>
    %54 = arith.addf %45, %53 : vector<1x8x128xf32>
    %cst_32 = arith.constant 0.000000e+00 : f32
    %55 = vector.broadcast %cst_32 : f32 to vector<1x8x128xf32>
    %56 = arith.maximumf %54, %55 : vector<1x8x128xf32>
    %57 = arith.addf %34, %56 : vector<1x8x128xf32>
    %c0_33 = arith.constant 0 : index
    %c0_34 = arith.constant 0 : index
    %58 = vector.load %arg12[%c0_33, %c0_34] : memref<128x128xbf16, #tpu.memory_space<vmem>>, vector<128x128xbf16>
    %c0_35 = arith.constant 0 : index
    %c0_36 = arith.constant 0 : index
    %59 = vector.load %arg13[%c0_35, %c0_36] : memref<1x128xf32, #tpu.memory_space<vmem>>, vector<1x128xf32>
    %60 = vector.shape_cast %57 : vector<1x8x128xf32> to vector<8x128xf32>
    %61 = arith.truncf %60 : vector<8x128xf32> to vector<8x128xbf16>
    %cst_37 = arith.constant dense<0.000000e+00> : vector<8x128xf32>
    %62 = tpu.matmul %61, %58, %cst_37 {dimension_numbers = #tpu.dot_dimension_numbers<[1], [0], [0], [1], [0, 0, 1, 1], [], []>} : vector<8x128xbf16>, vector<128x128xbf16>, vector<8x128xf32> -> vector<8x128xf32>
    %63 = vector.shape_cast %62 : vector<8x128xf32> to vector<1x8x128xf32>
    %64 = vector.shape_cast %59 : vector<1x128xf32> to vector<1x1x128xf32>
    %65 = vector.broadcast %64 : vector<1x1x128xf32> to vector<1x8x128xf32>
    %66 = arith.addf %63, %65 : vector<1x8x128xf32>
    %c0_38 = arith.constant 0 : index
    %c0_39 = arith.constant 0 : index
    %c0_40 = arith.constant 0 : index
    %67 = vector.load %arg14[%c0_38, %c0_39, %c0_40] : memref<1x8x128xf32, #tpu.memory_space<vmem>>, vector<1x8x128xf32>
    tpu.vector_store %arg14[%c0_38, %c0_39, %c0_40], %66 {strides = array<i32>} : memref<1x8x128xf32, #tpu.memory_space<vmem>>, vector<1x8x128xf32>,
    return
  }
  func.func @transform_0(%arg0: i32) -> (i32, i32, i32) {
    %c0_i32 = arith.constant 0 : i32
    %c0_i32_0 = arith.constant 0 : i32
    %c0_i32_1 = arith.constant 0 : i32
    return %arg0, %c0_i32, %c0_i32_0 : i32, i32, i32
  }
  func.func @transform_1(%arg0: i32) -> (i32, i32) {
    %c0_i32 = arith.constant 0 : i32
    %c0_i32_0 = arith.constant 0 : i32
    %c0_i32_1 = arith.constant 0 : i32
    return %c0_i32, %c0_i32_0 : i32, i32
  }
  func.func @transform_2(%arg0: i32) -> (i32, i32) {
    %c0_i32 = arith.constant 0 : i32
    %c0_i32_0 = arith.constant 0 : i32
    %c0_i32_1 = arith.constant 0 : i32
    return %c0_i32, %c0_i32_0 : i32, i32
  }
  func.func @transform_3(%arg0: i32) -> (i32, i32) {
    %c0_i32 = arith.constant 0 : i32
    %c0_i32_0 = arith.constant 0 : i32
    %c0_i32_1 = arith.constant 0 : i32
    return %c0_i32, %c0_i32_0 : i32, i32
  }
  func.func @transform_4(%arg0: i32) -> (i32, i32) {
    %c0_i32 = arith.constant 0 : i32
    %c0_i32_0 = arith.constant 0 : i32
    %c0_i32_1 = arith.constant 0 : i32
    return %c0_i32, %c0_i32_0 : i32, i32
  }
  func.func @transform_5(%arg0: i32) -> (i32, i32) {
    %c0_i32 = arith.constant 0 : i32
    %c0_i32_0 = arith.constant 0 : i32
    %c0_i32_1 = arith.constant 0 : i32
    return %c0_i32, %c0_i32_0 : i32, i32
  }
  func.func @transform_6(%arg0: i32) -> (i32, i32) {
    %c0_i32 = arith.constant 0 : i32
    %c0_i32_0 = arith.constant 0 : i32
    %c0_i32_1 = arith.constant 0 : i32
    return %c0_i32, %c0_i32_0 : i32, i32
  }
  func.func @transform_7(%arg0: i32) -> (i32, i32) {
    %c0_i32 = arith.constant 0 : i32
    %c0_i32_0 = arith.constant 0 : i32
    %c0_i32_1 = arith.constant 0 : i32
    return %c0_i32, %c0_i32_0 : i32, i32
  }
  func.func @transform_8(%arg0: i32) -> (i32, i32) {
    %c0_i32 = arith.constant 0 : i32
    %c0_i32_0 = arith.constant 0 : i32
    %c0_i32_1 = arith.constant 0 : i32
    return %c0_i32, %c0_i32_0 : i32, i32
  }
  func.func @transform_9(%arg0: i32) -> (i32, i32) {
    %c0_i32 = arith.constant 0 : i32
    %c0_i32_0 = arith.constant 0 : i32
    %c0_i32_1 = arith.constant 0 : i32
    return %c0_i32, %c0_i32_0 : i32, i32
  }
  func.func @transform_10(%arg0: i32) -> (i32, i32) {
    %c0_i32 = arith.constant 0 : i32
    %c0_i32_0 = arith.constant 0 : i32
    %c0_i32_1 = arith.constant 0 : i32
    return %c0_i32, %c0_i32_0 : i32, i32
  }
  func.func @transform_11(%arg0: i32) -> (i32, i32) {
    %c0_i32 = arith.constant 0 : i32
    %c0_i32_0 = arith.constant 0 : i32
    %c0_i32_1 = arith.constant 0 : i32
    return %c0_i32, %c0_i32_0 : i32, i32
  }
  func.func @transform_12(%arg0: i32) -> (i32, i32) {
    %c0_i32 = arith.constant 0 : i32
    %c0_i32_0 = arith.constant 0 : i32
    %c0_i32_1 = arith.constant 0 : i32
    return %c0_i32, %c0_i32_0 : i32, i32
  }
  func.func @transform_13(%arg0: i32) -> (i32, i32, i32) {
    %c0_i32 = arith.constant 0 : i32
    %c0_i32_0 = arith.constant 0 : i32
    %c0_i32_1 = arith.constant 0 : i32
    return %arg0, %c0_i32, %c0_i32_0 : i32, i32, i32
  }
}

</mosaic_0001>

<bundles_post_ra>
// kernel: tpu_custom_call.1
= control target key start
LH: loop header
LB: loop body
LE: loop exit
PB: predicated region body
PF: predicated region fallthrough
CT: control target
= control target key end

     0   :  { %s2579_s0 = inlined_call_operand.hbm [shape: f32[2,8,128], index: 0, kind: input, shape index: {}]   ;;  %s2580_s1 = inlined_call_operand.hbm [shape: bf16[128,128], index: 1, kind: input, shape index: {}]   ;;  %s2581_s2 = inlined_call_operand.vmem [shape: f32[1,128], index: 2, kind: input, shape index: {}]   ;;  %s2582_s3 = inlined_call_operand.hbm [shape: bf16[128,128], index: 3, kind: input, shape index: {}]   ;;  %s2583_s4 = inlined_call_operand.vmem [shape: f32[1,128], index: 4, kind: input, shape index: {}]   ;;  %s2584_s5 = inlined_call_operand.hbm [shape: bf16[128,128], index: 5, kind: input, shape index: {}]   ;;  %s2585_s6 = inlined_call_operand.vmem [shape: f32[1,128], index: 6, kind: input, shape index: {}]   ;;  %s2586_s7 = inlined_call_operand.hbm [shape: bf16[128,128], index: 7, kind: input, shape index: {}]   ;;  %s2587_s8 = inlined_call_operand.vmem [shape: f32[1,128], index: 8, kind: input, shape index: {}]   ;;  %s2588_s9 = inlined_call_operand.hbm [shape: bf16[128,128], index: 9, kind: input, shape index: {}]   ;;  %s2589_s10 = inlined_call_operand.vmem [shape: f32[1,128], index: 10, kind: input, shape index: {}]   ;;  %s2590_s11 = inlined_call_operand.hbm [shape: bf16[128,128], index: 11, kind: input, shape index: {}]   ;;  %s2591_s12 = inlined_call_operand.vmem [shape: f32[1,128], index: 12, kind: input, shape index: {}]   ;;  %s2592_s13 = inlined_call_operand.hbm [shape: f32[2,8,128], index: 13, kind: output, shape index: {}]  }
   0x1   :  { %2597 = sst [smem:[#allocation20_spill]] %s2580_s1 }
   0x2   :  { %2598 = sst [smem:[#allocation21_spill]] %s2583_s4 }
   0x3   :  { %2599 = sst [smem:[#allocation22_spill]] %s2587_s8 }
   0x4   :  { %2600 = sst [smem:[#allocation23_spill]] %s2589_s10 }
   0x5   :  { %2601 = sst [smem:[#allocation24_spill]] %s2591_s12 }
   0x6   :  { %2602 = sst [smem:[#allocation25_spill]] %s2592_s13 }
   0x7   :  { %18 = vsyncpa [#allocation3], 0 }
   0x8   :  { %20 = vsyncpa [#allocation3 + $0x1], 0 }
   0x9   :  { %21 = vsyncpa [#allocation6], 0 }
   0xa   :  { %22 = vsyncpa [#allocation9], 0 }
   0xb   :  { %23 = vsyncpa [#allocation12], 0 }
   0xc   :  { %24 = vsyncpa [#allocation4], 0 }
   0xd   :  { %26 = vsyncpa [#allocation4 + $0x1], 0  ;;  %s2149_s25 = smov 0   ;;  %s2151_s26 = smov 0  }
   0xe   :  { %s2153_s27 = smov 0   ;;  %s2155_s28 = smov 0  }
   0xf LB: > { %s2067_s29 = smov [#allocation5]   ;;  %s2170_s14 = sadd.s32 4294967295, %s2065_s28   ;;  %s2065_s28 = sphi %s2155_s28, %s2631_s28   ;;  %s2061_s27 = sphi %s2153_s27, %s2630_s27   ;;  %s2057_s26 = sphi %s2151_s26, %s2629_s26   ;;  %s2053_s25 = sphi %s2149_s25, %s2628_s25  }
  0x10   : > { %s353_s30 = sshll.u32 %s2067_s29, 4  ;;  %p1381_p0 = scmp.ge.s32.totalorder %s2065_s28, 1  ;;  %s2175_s30 = int_to_ptr.vmem [resolvable:$true] %s353_s30 }
  0x11   : > { %p2594_p1 = scmp.eq.s32.totalorder %s2170_s14, 0  ;;  %p341_p2 = scmp.lt.s32.totalorder %s2065_s28, 3 }
  0x12   : > { %s2068_s16 = smov [#allocation8]   ;;  %s2069_s19 = smov [#allocation11]  }
  0x13   : > { %p2177_p3 = pnand %p1381_p0, %p341_p2  ;;  %s385_s17 = sshll.u32 %s2068_s16, 4  ;;  %s2190_s17 = int_to_ptr.vmem [resolvable:$true] %s385_s17 }
  0x14   : > { %s417_s20 = sshll.u32 %s2069_s19, 4  ;;  %s2605_s1 = sld [smem:[#allocation20_spill]]  ;;  %s2192_s20 = int_to_ptr.vmem [resolvable:$true] %s417_s20 }
  0x15   : > { %s2603_s15 = scalar_select %p2177_p3, 1, 0 }
  0x16   : > { %p1658_p5 = pneg %p2177_p3 }
  0x18   : > { %p2186_p6 = pnand %p1658_p5, %p2594_p1 }
  0x1a   : > { %s1789_s23 = scalar_lea.hbm %s2605_s1, 1024  ;;  %p2202_p8 = pneg %p2186_p6 }
  0x1b   : > { %p1790_p7 = scmp.ne.s32.totalorder %s2605_s1, %s1789_s23  ;;  %p1796_p11 = scmp.lt.u32.totalorder %s1789_s23, %s2605_s1 }
  0x1d   : > { %p1792_p9 = pnand %p2202_p8, %p1790_p7 }
  0x1f   : > { %p1793_p10 = pneg %p1792_p9 }
  0x21   : > { %p1798_p12 = pnand %p1796_p11, %p1793_p10 }
  0x23   : > { %1801 = shalt.err (!%p1798_p12)
}
  0x24   : > { %s1802_s21 = scalar_lea.vmem %s2175_s30, 1024  ;;  %p1810_p5 = scmp.lt.s32.totalorder %s2175_s30, %s2175_s30 }
  0x25   : > { %p1803_p13 = scmp.ne.s32.totalorder %s2175_s30, %s1802_s21  ;;  %p1811_p4 = scmp.lt.s32.totalorder %s1802_s21, %s1802_s21 }
  0x27   : > { %p1805_p0 = pnand %p1803_p13, %p2202_p8  ;;  %p1812_p7 = por %p1811_p4, %p1810_p5 }
  0x29   : > { %p1806_p2 = pneg %p1805_p0 }
  0x2b   : > { %p1813_p9 = pnand %p1812_p7, %p1806_p2 }
  0x2d   : > { %1816 = shalt.err (!%p1813_p9)
}
  0x2e   : > { %s2070_s22 = smov 64   ;;  %s2071_s13 = smov 4  }
  0x2f   : > { %1661 = dma.hbm_to_vmem [thread:$0]  (!%p2186_p6), %s2605_s1, 1024, %s2175_s30, [#allocation6], %s2070_s22, %s2070_s22, %s2071_s13  }
  0x30   : > { %s1817_s21 = scalar_lea.hbm %s2584_s5, 1024 }
  0x31   : > { %p1818_p4 = scmp.ne.s32.totalorder %s2584_s5, %s1817_s21  ;;  %p1824_p12 = scmp.lt.u32.totalorder %s1817_s21, %s2584_s5 }
  0x33   : > { %p1820_p10 = pnand %p1818_p4, %p2202_p8 }
  0x35   : > { %p1821_p11 = pneg %p1820_p10 }
  0x37   : > { %p1826_p13 = pnand %p1824_p12, %p1821_p11 }
  0x39   : > { %1829 = shalt.err (!%p1826_p13)
}
  0x3a   : > { %s1830_s30 = scalar_lea.vmem %s2190_s17, 1024  ;;  %p1838_p7 = scmp.lt.s32.totalorder %s2190_s17, %s2190_s17 }
  0x3b   : > { %p1831_p0 = scmp.ne.s32.totalorder %s2190_s17, %s1830_s30  ;;  %p1839_p9 = scmp.lt.s32.totalorder %s1830_s30, %s1830_s30 }
  0x3d   : > { %p1833_p2 = pnand %p1831_p0, %p2202_p8  ;;  %p1840_p4 = por %p1839_p9, %p1838_p7 }
  0x3f   : > { %p1834_p5 = pneg %p1833_p2 }
  0x41   : > { %p1841_p10 = pnand %p1840_p4, %p1834_p5 }
  0x43   : > { %1844 = shalt.err (!%p1841_p10)
}
  0x44   : > { %1667 = dma.hbm_to_vmem [thread:$0]  (!%p2186_p6), %s2584_s5, 1024, %s2190_s17, [#allocation9], %s2070_s22, %s2070_s22, %s2071_s13  }
  0x45   : > { %s1845_s23 = scalar_lea.hbm %s2588_s9, 1024 }
  0x46   : > { %p1846_p11 = scmp.ne.s32.totalorder %s2588_s9, %s1845_s23  ;;  %p1852_p0 = scmp.lt.u32.totalorder %s1845_s23, %s2588_s9 }
  0x48   : > { %p1848_p12 = pnand %p1846_p11, %p2202_p8 }
  0x4a   : > { %p1849_p13 = pneg %p1848_p12 }
  0x4c   : > { %p1854_p2 = pnand %p1852_p0, %p1849_p13 }
  0x4e   : > { %1857 = shalt.err (!%p1854_p2)
}
  0x4f   : > { %s1858_s17 = scalar_lea.vmem %s2192_s20, 1024  ;;  %p1866_p4 = scmp.lt.s32.totalorder %s2192_s20, %s2192_s20 }
  0x50   : > { %p1859_p5 = scmp.ne.s32.totalorder %s2192_s20, %s1858_s17  ;;  %p1867_p10 = scmp.lt.s32.totalorder %s1858_s17, %s1858_s17 }
  0x52   : > { %p1861_p7 = pnand %p1859_p5, %p2202_p8  ;;  %p1868_p11 = por %p1867_p10, %p1866_p4 }
  0x54   : > { %p1862_p9 = pneg %p1861_p7 }
  0x56   : > { %p1869_p12 = pnand %p1868_p11, %p1862_p9 }
  0x58   : > { %1872 = shalt.err (!%p1869_p12)
}
  0x59   : > { %1673 = dma.hbm_to_vmem [thread:$0]  (!%p2186_p6), %s2588_s9, 1024, %s2192_s20, [#allocation12], %s2070_s22, %s2070_s22, %s2071_s13  }
  0x5a   : > { %s2072_s8 = smov [#allocation7]   ;;  %s2073_s12 = smov [#allocation10]  }
  0x5b   : > { %s369_s10 = sshll.u32 %s2072_s8, 4  ;;  %s401_s23 = sshll.u32 %s2073_s12, 4  ;;  %s370_s10 = int_to_ptr.vmem [resolvable:$true] %s369_s10  ;;  %s402_s23 = int_to_ptr.vmem [resolvable:$true] %s401_s23 }
  0x5c   : > { %s1873_s19 = scalar_lea.hbm %s2582_s3, 1024 }
  0x5d   : > { %p1874_p13 = scmp.ne.s32.totalorder %s2582_s3, %s1873_s19  ;;  %p1880_p5 = scmp.lt.u32.totalorder %s1873_s19, %s2582_s3 }
  0x5f   : > { %p1876_p0 = pnand %p1874_p13, %p2202_p8 }
  0x61   : > { %p1877_p2 = pneg %p1876_p0 }
  0x63   : > { %p1882_p7 = pnand %p1880_p5, %p1877_p2 }
  0x65   : > { %1885 = shalt.err (!%p1882_p7)
}
  0x66   : > { %s1886_s20 = scalar_lea.vmem %s370_s10, 1024  ;;  %p1894_p11 = scmp.lt.s32.totalorder %s370_s10, %s370_s10 }
  0x67   : > { %p1887_p9 = scmp.ne.s32.totalorder %s370_s10, %s1886_s20  ;;  %p1895_p12 = scmp.lt.s32.totalorder %s1886_s20, %s1886_s20 }
  0x69   : > { %p1889_p4 = pnand %p1887_p9, %p2202_p8  ;;  %p1896_p1 = por %p1895_p12, %p1894_p11 }
  0x6b   : > { %p1890_p10 = pneg %p1889_p4 }
  0x6d   : > { %p1897_p3 = pnand %p1896_p1, %p1890_p10 }
  0x6f   : > { %1900 = shalt.err (!%p1897_p3)
}
  0x70   : > { %1664 = dma.hbm_to_vmem [thread:$0]  (!%p2186_p6), %s2582_s3, 1024, %s370_s10, [#allocation6], %s2070_s22, %s2070_s22, %s2071_s13  }
  0x71   : > { %s1901_s24 = scalar_lea.hbm %s2586_s7, 1024 }
  0x72   : > { %p1902_p1 = scmp.ne.s32.totalorder %s2586_s7, %s1901_s24  ;;  %p1908_p0 = scmp.lt.u32.totalorder %s1901_s24, %s2586_s7 }
  0x74   : > { %p1904_p3 = pnand %p1902_p1, %p2202_p8 }
  0x76   : > { %p1905_p13 = pneg %p1904_p3 }
  0x78   : > { %p1910_p2 = pnand %p1908_p0, %p1905_p13 }
  0x7a   : > { %1913 = shalt.err (!%p1910_p2)
}
  0x7b   : > { %s1914_s30 = scalar_lea.vmem %s402_s23, 1024  ;;  %p1922_p4 = scmp.lt.s32.totalorder %s402_s23, %s402_s23 }
  0x7c   : > { %p1915_p5 = scmp.ne.s32.totalorder %s402_s23, %s1914_s30  ;;  %p1923_p10 = scmp.lt.s32.totalorder %s1914_s30, %s1914_s30 }
  0x7e   : > { %p1917_p7 = pnand %p1915_p5, %p2202_p8  ;;  %p1924_p11 = por %p1923_p10, %p1922_p4 }
  0x80   : > { %p1918_p9 = pneg %p1917_p7 }
  0x82   : > { %p1925_p12 = pnand %p1924_p11, %p1918_p9 }
  0x84   : > { %1928 = shalt.err (!%p1925_p12)
}
  0x85   : > { %1670 = dma.hbm_to_vmem [thread:$0]  (!%p2186_p6), %s2586_s7, 1024, %s402_s23, [#allocation9], %s2070_s22, %s2070_s22, %s2071_s13  }
  0x86   : > { %s2074_s1 = smov [#allocation13]   ;;  %s1929_s24 = scalar_lea.hbm %s2590_s11, 1024 }
  0x87   : > { %s433_s4 = sshll.u32 %s2074_s1, 4  ;;  %p1930_p1 = scmp.ne.s32.totalorder %s2590_s11, %s1929_s24  ;;  %s434_s4 = int_to_ptr.vmem [resolvable:$true] %s433_s4 }
  0x88   : > { %p1936_p0 = scmp.lt.u32.totalorder %s1929_s24, %s2590_s11 }
  0x89   : > { %p1932_p3 = pnand %p1930_p1, %p2202_p8 }
  0x8b   : > { %p1933_p13 = pneg %p1932_p3 }
  0x8d   : > { %p1938_p2 = pnand %p1936_p0, %p1933_p13 }
  0x8f   : > { %1941 = shalt.err (!%p1938_p2)
}
  0x90   : > { %s1942_s23 = scalar_lea.vmem %s434_s4, 1024  ;;  %p1950_p4 = scmp.lt.s32.totalorder %s434_s4, %s434_s4 }
  0x91   : > { %p1943_p5 = scmp.ne.s32.totalorder %s434_s4, %s1942_s23  ;;  %p1951_p10 = scmp.lt.s32.totalorder %s1942_s23, %s1942_s23 }
  0x93   : > { %p1945_p7 = pnand %p1943_p5, %p2202_p8  ;;  %p1952_p11 = por %p1951_p10, %p1950_p4 }
  0x95   : > { %p1946_p9 = pneg %p1945_p7 }
  0x97   : > { %p1953_p12 = pnand %p1952_p11, %p1946_p9 }
  0x99   : > { %1956 = shalt.err (!%p1953_p12)
}
  0x9a   : > { %1676 = dma.hbm_to_vmem [thread:$0]  (!%p2186_p6), %s2590_s11, 1024, %s434_s4, [#allocation12], %s2070_s22, %s2070_s22, %s2071_s13  }
  0x9b   : > { %s1380_s18 = sadd.s32 4294967294, %s2065_s28   ;;  %s2343_s16 = sadd.s32 1, %s2065_s28  }
  0x9c   : > { %s36_s20 = ssub.s32 %s2065_s28, %s2343_s16  ;;  %s39_s1 = sadd.s32 1, %s2061_s27 }
  0x9d   : > { %p37_p8 = scmp.eq.s32.totalorder %s36_s20, 0  ;;  %p46_p1 = scmp.ne.s32.totalorder %s2061_s27, %s2057_s26 }
  0x9e   : > { %p47_p3 = scmp.eq.s32.totalorder %s2065_s28, 0  ;;  %p52_p13 = scmp.ne.s32.totalorder %s2057_s26, %s2053_s25 }
  0x9f   : > { %s2354_s8 = scalar_select %p37_p8, %s2061_s27, %s39_s1  }
  0xa0   : > { %p2356_p0 = por %p47_p3, %p46_p1  ;;  %p2608_p2 = scmp.eq.s32.totalorder %s2170_s14, 0 }
  0xa1   : > { %p328_p5 = scmp.eq.s32.totalorder %s2170_s14, 1  ;;  %p334_p7 = scmp.eq.s32.totalorder %s1380_s18, 1 }
  0xa2   : > { %p2362_p6 = por %p2608_p2, %p52_p13  ;;  %p1691_p9 = scmp.lt.s32.totalorder %s2065_s28, 2 }
  0xa3   : > { %s450_s13 = sand.u32 1, %s2061_s27   ;;  %p2369_p4 = por %p328_p5, %p46_p1 }
  0xa4   : > { %p2373_p10 = por %p334_p7, %p52_p13  ;;  %s1389_s29 = sshll.u32 %s450_s13, 3 }
  0xa5   : > { %s2610_s4 = scalar_select %p2369_p4, 1, 0 }
  0xa6   : > { %s2611_s24 = scalar_select %p2373_p10, 1, 0 }
  0xa7   : > { %s1390_s19 = sshll.u32 %s2065_s28, 7  ;;  %s454_s30 = scalar_lea.vmem [#allocation2], %s1389_s29 }
  0xa8   : > { %s2381_s23 = scalar_lea.hbm %s2579_s0, %s1390_s19  ;;  %s461_s10 = sshll.u32 %s454_s30, 4  ;;  %s2383_s10 = int_to_ptr.vmem [resolvable:$true] %s461_s10 }
  0xa9   : > { %p2387_p11 = pnand %p1691_p9, %p2356_p0  ;;  %s451_s20 = scalar_lea.sflag [#allocation3], %s450_s13 }
  0xaa   : > { %s1957_s1 = scalar_lea.hbm %s2381_s23, 128  ;;  %s1962_s21 = scalar_lea.hbm %s2579_s0, 256 }
  0xab   : > { %p1958_p12 = scmp.ne.s32.totalorder %s2381_s23, %s1957_s1  ;;  %p1959_p8 = pneg %p2387_p11 }
  0xac   : > { %p1963_p13 = scmp.lt.u32.totalorder %s2381_s23, %s2579_s0  ;;  %p1964_p0 = scmp.lt.u32.totalorder %s1962_s21, %s1957_s1 }
  0xad   : > { %p1960_p1 = pnand %p1959_p8, %p1958_p12  ;;  %p1966_p5 = scmp.lt.u32.totalorder %s1957_s1, %s2381_s23 }
  0xae   : > { %p1965_p2 = por %p1964_p0, %p1963_p13 }
  0xaf   : > { %p1961_p3 = pneg %p1960_p1 }
  0xb0   : > { %p1967_p7 = por %p1966_p5, %p1965_p2 }
  0xb2   : > { %p1968_p9 = pnand %p1967_p7, %p1961_p3 }
  0xb4   : > { %1971 = shalt.err (!%p1968_p9)
}
  0xb5   : > { %s1972_s13 = scalar_lea.vmem %s2383_s10, 128  ;;  %s2075_s30 = smov [#allocation2]  }
  0xb6   : > { %p1973_p12 = scmp.ne.s32.totalorder %s2383_s10, %s1972_s13  ;;  %s1977_s29 = sshll.u32 %s2075_s30, 4  ;;  %s1978_s29 = int_to_ptr.vmem [resolvable:$false] %s1977_s29 }
  0xb7   : > { %s1979_s19 = scalar_lea.vmem %s1978_s29, 256  ;;  %p1980_p4 = scmp.lt.s32.totalorder %s2383_s10, %s1978_s29 }
  0xb8   : > { %p1975_p1 = pnand %p1973_p12, %p1959_p8  ;;  %p1981_p13 = scmp.lt.s32.totalorder %s1979_s19, %s1972_s13 }
  0xba   : > { %p1976_p10 = pneg %p1975_p1  ;;  %p1982_p0 = por %p1981_p13, %p1980_p4 }
  0xbc   : > { %p1983_p2 = pnand %p1982_p0, %p1976_p10 }
  0xbe   : > { %1986 = shalt.err (!%p1983_p2)
}
  0xbf   : > { %1680 = dma.hbm_to_vmem [thread:$0]  (!%p2387_p11), %s2381_s23, 128, %s2383_s10, %s451_s20  }
  0xc0   : > { %p2613_p3 = scmp.ne.s32.totalorder %s2603_s15, 0 }
  0xc1   : > { %s2419_s1 = sand.u32 (!%p2613_p3), 1, %s2057_s26  }
  0xc2   : > { %470 = sbr.rel (%p2613_p3) target bundleno = 1167 (0x48f), region = 72  ;;  %s1392_s21 = sshll.u32 (!%p2613_p3), %s2419_s1, 3 }
  0xc3   : > { %s473_s12 = scalar_lea.sflag (!%p2613_p3), [#allocation3], %s2419_s1  ;;  %s2425_s17 = scalar_lea.vmem (!%p2613_p3), [#allocation2], %s1392_s21 }
  0xc9   : > { %2032 = dma.done.wait (%p2362_p6), %s473_s12, 128  }
  0xca   : > { %2034 = vsyncadd (%p2362_p6), %s473_s12, 4294967168  ;;  %p2614_p4 = scmp.eq.s32.totalorder %s2170_s14, 0 }
  0xcc   : > { %2036 = dma.done.wait (%p2614_p4), [#allocation6], 2048   ;;  %p2615_p10 = pmov %p2614_p4 }
  0xcd   : > { %p2616_p11 = pmov %p2614_p4 }
  0xce   : > { %2038 = vsyncadd (%p2615_p10), [#allocation6], 4294965248 }
  0xcf   : > { %2040 = dma.done.wait (%p2616_p11), [#allocation9], 2048   ;;  %p2617_p8 = pmov %p2614_p4 }
  0xd0   : > { %p2618_p5 = pmov %p2614_p4 }
  0xd1   : > { %2042 = vsyncadd (%p2617_p8), [#allocation9], 4294965248 }
  0xd2   : > { %2044 = dma.done.wait (%p2618_p5), [#allocation12], 2048   ;;  %p2619_p7 = pmov %p2614_p4 }
  0xd3   : > { %v2076_v0 = vmov 0.0   ;;  %vm2077_vm0 = vmmov 0   ;;  %v1741_v1 = vld [vmem:[#allocation5] sm:$0xff]   ;;  %v1742_v2 = vld [vmem:[#allocation5 + $0x8] sm:$0xff]   ;;  %v1743_v3 = vld [vmem:[#allocation5 + $0x10] sm:$0xff]   ;;  %v885_v63 = vlaneseq  ;;  %s2620_s13 = sld [smem:[#allocation21_spill]] }
  0xd4   : > { %2046 = vsyncadd (%p2619_p7), [#allocation12], 4294965248  ;;  %1510 = vmatprep.subr.bf16.mxu0 %v2076_v0  ;;  %1526 = vmatprep.mubr.msk.bf16.mxu0 %vm2077_vm0, %v2076_v0  ;;  %v1749_v4 = vld [vmem:[#allocation7] sm:$0xff]   ;;  %v1744_v5 = vld [vmem:[#allocation5 + $0x18] sm:$0xff]   ;;  %s2621_s19 = sld [smem:[#allocation23_spill]]  ;;  %s2622_s15 = sld [smem:[#allocation22_spill]] }
  0xd5   : > { %1530 = vmatprep.subr.bf16.mxu1 %v2076_v0  ;;  %1546 = vmatprep.mubr.msk.bf16.mxu1 %vm2077_vm0, %v2076_v0  ;;  %v1750_v6 = vld [vmem:[#allocation7 + $0x8] sm:$0xff]   ;;  %v1745_v7 = vld [vmem:[#allocation5 + $0x20] sm:$0xff]   ;;  %v1751_v8 = vld [vmem:[#allocation7 + $0x10] sm:$0xff]   ;;  %s2623_s10 = sld [smem:[#allocation24_spill]]  ;;  %s1453_s18 = sshll.u32 %s2170_s14, 7 }
  0xd6   : > { %1511 = vmatpush3.bf16.msra.mxu0 %v1741_v1  ;;  %1531 = vmatpush3.bf16.msra.mxu1 %v1749_v4  ;;  %v1746_v9 = vld [vmem:[#allocation5 + $0x28] sm:$0xff]   ;;  %v1752_v10 = vld [vmem:[#allocation7 + $0x18] sm:$0xff]   ;;  %v1747_v11 = vld [vmem:[#allocation5 + $0x30] sm:$0xff]   ;;  %v886_v1 = vshrl.u32 %v885_v63, 7  ;;  %s542_s20 = scalar_lea.vmem [#allocation14], %s1392_s21  ;;  %s1240_s14 = scalar_lea.sflag [#allocation4], %s2419_s1 }
  0xd7   : > { %1512 = vmatprep.subr.bf16.mxu0 %v2076_v0  ;;  %1532 = vmatprep.subr.bf16.mxu1 %v2076_v0  ;;  %v1754_v12 = vld [vmem:[#allocation7 + $0x20] sm:$0xff]   ;;  %v1748_v13 = vld [vmem:[#allocation5 + $0x38] sm:$0xff]   ;;  %v1756_v15 = vld [vmem:[#allocation7 + $0x28] sm:$0xff]   ;;  %p2625_p9 = scmp.ne.s32.totalorder %s2610_s4, 0  ;;  %s2078_s21 = smov [#allocation14]  }
  0xd8   : > { %v544_v14 = vld [vmem:[%s2425_s17] sm:$0xff]  ;;  %v1753_v16 = vld [vmem:[#allocation8] sm:$0xff]   ;;  %v1755_v18 = vld [vmem:[#allocation8 + $0x8] sm:$0xff]  }
  0xd9   : > { %v562_v17 = vpack.c.bf16 %v544_v14, %v544_v14  ;;  %v1757_v19 = vld [vmem:[#allocation8 + $0x10] sm:$0xff]   ;;  %v1759_v21 = vld [vmem:[#allocation8 + $0x18] sm:$0xff]   ;;  %v1761_v23 = vld [vmem:[#allocation8 + $0x20] sm:$0xff]  }
  0xda   : > { %1513 = vmatpush3.bf16.msra.mxu0 %v1742_v2  ;;  %1533 = vmatpush3.bf16.msra.mxu1 %v1750_v6  ;;  %v1758_v20 = vld [vmem:[#allocation7 + $0x30] sm:$0xff]   ;;  %v1760_v22 = vld [vmem:[#allocation7 + $0x38] sm:$0xff]   ;;  %v1762_v24 = vld [vmem:[#allocation8 + $0x28] sm:$0xff]  }
  0xdb   : > { %1514 = vmatprep.subr.bf16.mxu0 %v2076_v0  ;;  %1534 = vmatprep.subr.bf16.mxu1 %v2076_v0  ;;  %v1763_v25 = vld [vmem:[#allocation8 + $0x30] sm:$0xff]   ;;  %v1764_v26 = vld [vmem:[#allocation8 + $0x38] sm:$0xff]   ;;  %v1765_v34 = vld [vmem:[#allocation10] sm:$0xff]  }
  0xdc   : > { %v1408_v27 = vld [vmem:[%s2581_s2] ss:$0 sm:$0xff]  ;;  %v1766_v44 = vld [vmem:[#allocation10 + $0x8] sm:$0xff]   ;;  %v1769_v46 = vld [vmem:[#allocation11] sm:$0xff]  }
  0xdd   : > { %v1767_v45 = vld [vmem:[#allocation10 + $0x10] sm:$0xff]   ;;  %v1768_v47 = vld [vmem:[#allocation10 + $0x18] sm:$0xff]   ;;  %v1770_v48 = vld [vmem:[#allocation10 + $0x20] sm:$0xff]  }
  0xde   : > { %1515 = vmatpush3.bf16.msra.mxu0 %v1743_v3  ;;  %1535 = vmatpush3.bf16.msra.mxu1 %v1751_v8  ;;  %v1771_v49 = vld [vmem:[#allocation11 + $0x8] sm:$0xff]   ;;  %v1773_v51 = vld [vmem:[#allocation11 + $0x10] sm:$0xff]   ;;  %v1775_v53 = vld [vmem:[#allocation11 + $0x18] sm:$0xff]   ;;  %v887_v3 = vsub.s32 0, %v886_v1 }
  0xdf   : > { %1516 = vmatprep.subr.bf16.mxu0 %v2076_v0  ;;  %1536 = vmatprep.subr.bf16.mxu1 %v2076_v0  ;;  %v1772_v50 = vld [vmem:[#allocation10 + $0x28] sm:$0xff]   ;;  %v1774_v52 = vld [vmem:[#allocation10 + $0x30] sm:$0xff]   ;;  %v1776_v54 = vld [vmem:[#allocation10 + $0x38] sm:$0xff]  }
  0xe0   : > { %v1777_v55 = vld [vmem:[#allocation11 + $0x20] sm:$0xff]   ;;  %v1778_v56 = vld [vmem:[#allocation11 + $0x28] sm:$0xff]   ;;  %v1779_v57 = vld [vmem:[#allocation11 + $0x30] sm:$0xff]  }
  0xe1   : > { %v1780_v58 = vld [vmem:[#allocation11 + $0x38] sm:$0xff]   ;;  %v692_v2 = vld [vmem:[%s2585_s6] sm:$0x1] }
  0xe2   : > { %1517 = vmatpush3.bf16.msra.mxu0 %v1744_v5  ;;  %1537 = vmatpush3.bf16.msra.mxu1 %v1752_v10  ;;  %v1417_v4 = vld [vmem:[%s2620_s13] ss:$0 sm:$0xff]  ;;  %s1253_s13 = sshll.u32 %s542_s20, 4  ;;  %s2537_s13 = int_to_ptr.vmem [resolvable:$true] %s1253_s13 }
  0xe3   : > { %1518 = vmatprep.subr.bf16.mxu0 %v2076_v0  ;;  %1538 = vmatprep.subr.bf16.mxu1 %v2076_v0  ;;  %s1987_s17 = scalar_lea.vmem %s2537_s13, 128 }
  0xe4   : > { %p1988_p6 = scmp.ne.s32.totalorder %s2537_s13, %s1987_s17 }
  0xe6   : > { %1519 = vmatpush3.bf16.msra.mxu0 %v1745_v7  ;;  %1539 = vmatpush3.bf16.msra.mxu1 %v1754_v12  ;;  %p1989_p12 = pnand %p1988_p6, %p2625_p9 }
  0xe7   : > { %1520 = vmatprep.subr.bf16.mxu0 %v2076_v0  ;;  %1540 = vmatprep.subr.bf16.mxu1 %v2076_v0 }
  0xe8   : > { %p1990_p1 = pneg %p1989_p12 }
  0xea   : > { %1521 = vmatpush3.bf16.msra.mxu0 %v1746_v9  ;;  %1541 = vmatpush3.bf16.msra.mxu1 %v1756_v15  ;;  %v1781_v15 = vld [vmem:[#allocation13] sm:$0xff]  }
  0xeb   : > { %1522 = vmatprep.subr.bf16.mxu0 %v2076_v0  ;;  %1542 = vmatprep.subr.bf16.mxu1 %v2076_v0 }
  0xee   : > { %1523 = vmatpush3.bf16.msra.mxu0 %v1747_v11  ;;  %1543 = vmatpush3.bf16.msra.mxu1 %v1758_v20 }
  0xef   : > { %1524 = vmatprep.subr.bf16.mxu0 %v2076_v0  ;;  %1544 = vmatprep.subr.bf16.mxu1 %v2076_v0 }
  0xf2   : > { %1525 = vmatpush3.bf16.msra.mxu0 %v1748_v13  ;;  %1545 = vmatpush3.bf16.msra.mxu1 %v1760_v22 }
  0xf3   : > { %1550 = vmatprep.subr.bf16.mxu0 %v2076_v0  ;;  %1570 = vmatprep.subr.bf16.mxu1 %v2076_v0 }
  0xf5   : > { %1527 = vmatmul.mubr.bf16.vlgmr.msra.gmra.mrb[0].mxu0 %v562_v17 }
  0xf6   : > { %1551 = vmatpush3.bf16.msra.mxu0 %v1753_v16  ;;  %1566 = vmatprep.mubr.msk.bf16.mxu0 %vm2077_vm0, %v2076_v0 }
  0xf7   : > { %1552 = vmatprep.subr.bf16.mxu0 %v2076_v0 }
  0xfa   : > { %1553 = vmatpush3.bf16.msra.mxu0 %v1755_v18 }
  0xfb   : > { %1554 = vmatprep.subr.bf16.mxu0 %v2076_v0 }
  0xfe   : > { %1555 = vmatpush3.bf16.msra.mxu0 %v1757_v19 }
  0xff   : > { %1556 = vmatprep.subr.bf16.mxu0 %v2076_v0 }
 0x102   : > { %1557 = vmatpush3.bf16.msra.mxu0 %v1759_v21 }
 0x103   : > { %1558 = vmatprep.subr.bf16.mxu0 %v2076_v0 }
 0x106   : > { %1559 = vmatpush3.bf16.msra.mxu0 %v1761_v23 }
 0x107   : > { %1560 = vmatprep.subr.bf16.mxu0 %v2076_v0 }
 0x10a   : > { %1561 = vmatpush3.bf16.msra.mxu0 %v1762_v24 }
 0x10b   : > { %1562 = vmatprep.subr.bf16.mxu0 %v2076_v0 }
 0x10e   : > { %1563 = vmatpush3.bf16.msra.mxu0 %v1763_v25  ;;  %v1782_v25 = vld [vmem:[#allocation13 + $0x8] sm:$0xff]  }
 0x10f   : > { %1564 = vmatprep.subr.bf16.mxu0 %v2076_v0 }
 0x112   : > { %1565 = vmatpush3.bf16.msra.mxu0 %v1764_v26  ;;  %v1783_v26 = vld [vmem:[#allocation13 + $0x10] sm:$0xff]  }
 0x113   : > { %1590 = vmatprep.subr.bf16.mxu0 %v2076_v0 }
 0x1c8   : > { %v645_v28 = vpop.f32.mrb[0].mxu0 }
 0x1c9   : > { %v657_v29 = vadd.f32 %v1408_v27, %v645_v28  ;;  %v1528_v30 = vpop.f32.mrb[1].mxu0  ;;  %v1784_v27 = vld [vmem:[#allocation13 + $0x18] sm:$0xff]   ;;  %v1785_v28 = vld [vmem:[#allocation13 + $0x20] sm:$0xff]  }
 0x1ca   : > { %v648_v31 = vpop.f32.mrb[2].mxu0  ;;  %v1787_v30 = vld [vmem:[#allocation13 + $0x30] sm:$0xff]  }
 0x1cb   : > { %v2479_v32 = vmax.f32 %v657_v29, 0.0  ;;  %v1529_v33 = vpop.f32.mrb[3].mxu0  ;;  %v1786_v29 = vld [vmem:[#allocation13 + $0x28] sm:$0xff]   ;;  %v1788_v31 = vld [vmem:[#allocation13 + $0x38] sm:$0xff]  }
 0x1cd   : > { %v789_v35 = vrot.slane %v2479_v32, 4  ;;  %v693_v36 = vpack.c.bf16 %v2479_v32, %v2479_v32 }
 0x1cf   : > { %v790_v37 = vadd.f32 %v789_v35, %v2479_v32  ;;  %1547 = vmatmul.mubr.bf16.vlgmr.msra.gmra.mrb[0].mxu1 %v693_v36  ;;  %v925_v36 = vld [vmem:[%s2621_s19] sm:$0x1]  ;;  %s2624_s19 = sld [smem:[#allocation25_spill]] }
 0x1d0   : > { %1571 = vmatpush3.bf16.msra.mxu1 %v1765_v34  ;;  %1586 = vmatprep.mubr.msk.bf16.mxu1 %vm2077_vm0, %v2076_v0 }
 0x1d1   : > { %v791_v38 = vrot.slane %v790_v37, 2  ;;  %1572 = vmatprep.subr.bf16.mxu1 %v2076_v0 }
 0x1d3   : > { %v792_v39 = vadd.f32 %v791_v38, %v790_v37  ;;  %v1434_v37 = vld [vmem:[%s2622_s15] ss:$0 sm:$0xff]  ;;  %s1991_s15 = sshll.u32 %s2078_s21, 4  ;;  %s1992_s15 = int_to_ptr.vmem [resolvable:$false] %s1991_s15 }
 0x1d4   : > { %1573 = vmatpush3.bf16.msra.mxu1 %v1766_v44  ;;  %s1993_s22 = scalar_lea.vmem %s1992_s15, 256  ;;  %p1994_p13 = scmp.lt.s32.totalorder %s2537_s13, %s1992_s15 }
 0x1d5   : > { %v793_v40 = vrot.slane %v792_v39, 1  ;;  %1574 = vmatprep.subr.bf16.mxu1 %v2076_v0  ;;  %s2535_s12 = scalar_lea.hbm %s2624_s19, %s1453_s18  ;;  %p1995_p0 = scmp.lt.s32.totalorder %s1993_s22, %s1987_s17 }
 0x1d7   : > { %v794_v41 = vadd.f32 %v793_v40, %v792_v39  ;;  %p1996_p2 = por %p1995_p0, %p1994_p13 }
 0x1d8   : > { %1575 = vmatpush3.bf16.msra.mxu1 %v1767_v45 }
 0x1d9   : > { %v795_v42 = vmul.f32 0.125, %v794_v41  ;;  %1576 = vmatprep.subr.bf16.mxu1 %v2076_v0  ;;  %p1997_p3 = pnand %p1996_p2, %p1990_p1 }
 0x1db   : > { %v796_v43 = vpack.c.bf16 %v795_v42, %v795_v42 }
 0x1dc   : > { %1577 = vmatpush3.bf16.msra.mxu1 %v1768_v47 }
 0x1dd   : > { %1567 = vmatmul.mubr.bf16.vlgmr.msra.gmra.mrb[4].mxu0 %v796_v43  ;;  %1578 = vmatprep.subr.bf16.mxu1 %v2076_v0 }
 0x1de   : > { %1606 = vmatprep.mubr.msk.bf16.mxu0 %vm2077_vm0, %v2076_v0  ;;  %1591 = vmatpush3.bf16.msra.mxu0 %v1769_v46 }
 0x1df   : > { %1592 = vmatprep.subr.bf16.mxu0 %v2076_v0 }
 0x1e0   : > { %1579 = vmatpush3.bf16.msra.mxu1 %v1770_v48  ;;  %v1451_v48 = vld [vmem:[%s2623_s10] ss:$0 sm:$0xff] }
 0x1e1   : > { %1580 = vmatprep.subr.bf16.mxu1 %v2076_v0 }
 0x1e2   : > { %1593 = vmatpush3.bf16.msra.mxu0 %v1771_v49 }
 0x1e3   : > { %1594 = vmatprep.subr.bf16.mxu0 %v2076_v0 }
 0x1e4   : > { %1581 = vmatpush3.bf16.msra.mxu1 %v1772_v50 }
 0x1e5   : > { %1582 = vmatprep.subr.bf16.mxu1 %v2076_v0 }
 0x1e6   : > { %1595 = vmatpush3.bf16.msra.mxu0 %v1773_v51 }
 0x1e7   : > { %1596 = vmatprep.subr.bf16.mxu0 %v2076_v0 }
 0x1e8   : > { %1583 = vmatpush3.bf16.msra.mxu1 %v1774_v52 }
 0x1e9   : > { %1584 = vmatprep.subr.bf16.mxu1 %v2076_v0 }
 0x1ea   : > { %1597 = vmatpush3.bf16.msra.mxu0 %v1775_v53 }
 0x1eb   : > { %1598 = vmatprep.subr.bf16.mxu0 %v2076_v0 }
 0x1ec   : > { %1585 = vmatpush3.bf16.msra.mxu1 %v1776_v54 }
 0x1ed   : > { %1610 = vmatprep.subr.bf16.mxu1 %v2076_v0 }
 0x1ee   : > { %1599 = vmatpush3.bf16.msra.mxu0 %v1777_v55 }
 0x1ef   : > { %1600 = vmatprep.subr.bf16.mxu0 %v2076_v0 }
 0x1f2   : > { %1601 = vmatpush3.bf16.msra.mxu0 %v1778_v56 }
 0x1f3   : > { %1602 = vmatprep.subr.bf16.mxu0 %v2076_v0 }
 0x1f6   : > { %1603 = vmatpush3.bf16.msra.mxu0 %v1779_v57 }
 0x1f7   : > { %1604 = vmatprep.subr.bf16.mxu0 %v2076_v0 }
 0x1fa   : > { %1605 = vmatpush3.bf16.msra.mxu0 %v1780_v58 }
 0x2a2   : > { %v776_v59 = vpop.f32.mrb[0].mxu1 }
 0x2a3   : > { %v1548_v60 = vpop.f32.mrb[1].mxu1  ;;  %v788_v9 = vadd.f32 %v1417_v4, %v776_v59 }
 0x2a4   : > { %v779_v61 = vpop.f32.mrb[2].mxu1 }
 0x2a5   : > { %v1549_v62 = vpop.f32.mrb[3].mxu1 }
 0x2b0   : > { %v879_v5 = vpop.f32.mrb[4].mxu0 }
 0x2b1   : > { %v880_v6 = vadd.f32 %v879_v5, %v692_v2  ;;  %v1568_v7 = vpop.f32.mrb[5].mxu0 }
 0x2b2   : > { %v882_v8 = vpop.f32.mrb[6].mxu0 }
 0x2b3   : > { %v888_v10 = vrot.slane %v880_v6, %v887_v3  ;;  %v1569_v11 = vpop.f32.mrb[7].mxu0 }
 0x2b5   : > { %v889_v12 = vadd.f32 %v888_v10, %v788_v9 }
 0x2b7   : > { %v890_v13 = vmax.f32 %v889_v12, 0.0 }
 0x2b9   : > { %v891_v14 = vadd.f32 %v890_v13, %v2479_v32 }
 0x2bb   : > { %v926_v16 = vpack.c.bf16 %v891_v14, %v891_v14  ;;  %v1022_v17 = vrot.slane %v891_v14, 4 }
 0x2bd   : > { %1587 = vmatmul.mubr.bf16.vlgmr.msra.gmra.mrb[4].mxu1 %v926_v16  ;;  %v1023_v18 = vadd.f32 %v1022_v17, %v891_v14 }
 0x2be   : > { %1611 = vmatpush3.bf16.msra.mxu1 %v1781_v15  ;;  %1626 = vmatprep.mubr.msk.bf16.mxu1 %vm2077_vm0, %v2076_v0 }
 0x2bf   : > { %v1024_v19 = vrot.slane %v1023_v18, 2  ;;  %1612 = vmatprep.subr.bf16.mxu1 %v2076_v0 }
 0x2c1   : > { %v1025_v20 = vadd.f32 %v1024_v19, %v1023_v18 }
 0x2c2   : > { %1613 = vmatpush3.bf16.msra.mxu1 %v1782_v25 }
 0x2c3   : > { %v1026_v21 = vrot.slane %v1025_v20, 1  ;;  %1614 = vmatprep.subr.bf16.mxu1 %v2076_v0 }
 0x2c5   : > { %v1027_v22 = vadd.f32 %v1026_v21, %v1025_v20 }
 0x2c6   : > { %1615 = vmatpush3.bf16.msra.mxu1 %v1783_v26 }
 0x2c7   : > { %v1028_v23 = vmul.f32 0.125, %v1027_v22  ;;  %1616 = vmatprep.subr.bf16.mxu1 %v2076_v0 }
 0x2c9   : > { %v1029_v24 = vpack.c.bf16 %v1028_v23, %v1028_v23 }
 0x2ca   : > { %1617 = vmatpush3.bf16.msra.mxu1 %v1784_v27 }
 0x2cb   : > { %1607 = vmatmul.mubr.bf16.vlgmr.msra.gmra.mrb[8].mxu0 %v1029_v24  ;;  %1618 = vmatprep.subr.bf16.mxu1 %v2076_v0 }
 0x2ce   : > { %1619 = vmatpush3.bf16.msra.mxu1 %v1785_v28 }
 0x2cf   : > { %1620 = vmatprep.subr.bf16.mxu1 %v2076_v0 }
 0x2d2   : > { %1621 = vmatpush3.bf16.msra.mxu1 %v1786_v29 }
 0x2d3   : > { %1622 = vmatprep.subr.bf16.mxu1 %v2076_v0 }
 0x2d6   : > { %1623 = vmatpush3.bf16.msra.mxu1 %v1787_v30 }
 0x2d7   : > { %1624 = vmatprep.subr.bf16.mxu1 %v2076_v0 }
 0x2da   : > { %1625 = vmatpush3.bf16.msra.mxu1 %v1788_v31 }
 0x390   : > { %v1009_v32 = vpop.f32.mrb[4].mxu1 }
 0x391   : > { %v1588_v33 = vpop.f32.mrb[5].mxu1  ;;  %v1021_v41 = vadd.f32 %v1434_v37, %v1009_v32 }
 0x392   : > { %v1012_v34 = vpop.f32.mrb[6].mxu1 }
 0x393   : > { %v1589_v35 = vpop.f32.mrb[7].mxu1 }
 0x39e   : > { %v1112_v38 = vpop.f32.mrb[8].mxu0 }
 0x39f   : > { %v1113_v39 = vadd.f32 %v1112_v38, %v925_v36  ;;  %v1608_v40 = vpop.f32.mrb[9].mxu0 }
 0x3a0   : > { %v1115_v0 = vpop.f32.mrb[10].mxu0 }
 0x3a1   : > { %v1121_v42 = vrot.slane %v1113_v39, %v887_v3  ;;  %v1609_v43 = vpop.f32.mrb[11].mxu0 }
 0x3a3   : > { %v1122_v44 = vadd.f32 %v1121_v42, %v1021_v41 }
 0x3a5   : > { %v1123_v45 = vmax.f32 %v1122_v44, 0.0 }
 0x3a7   : > { %v1124_v46 = vadd.f32 %v1123_v45, %v891_v14 }
 0x3a9   : > { %v1142_v47 = vpack.c.bf16 %v1124_v46, %v1124_v46 }
 0x3ab   : > { %1627 = vmatmul.mubr.bf16.vlgmr.msra.gmra.mrb[8].mxu1 %v1142_v47 }
 0x47e   : > { %v1225_v49 = vpop.f32.mrb[8].mxu1 }
 0x47f   : > { %v1237_v50 = vadd.f32 %v1451_v48, %v1225_v49  ;;  %v1628_v51 = vpop.f32.mrb[9].mxu1 }
 0x480   : > { %v1228_v52 = vpop.f32.mrb[10].mxu1 }
 0x481   : > { %1238 = vst [vmem:[%s542_s20] sm:$0xff] %v1237_v50  ;;  %v1629_v53 = vpop.f32.mrb[11].mxu1 }
 0x482   : > { %2000 = shalt.err (!%p1997_p3)
}
 0x483   : > { %s2001_s1 = scalar_lea.hbm %s2535_s12, 128  ;;  %s2005_s18 = scalar_lea.hbm %s2624_s19, 256 }
 0x484   : > { %p2002_p4 = scmp.ne.s32.totalorder %s2535_s12, %s2001_s1  ;;  %p2006_p8 = scmp.lt.u32.totalorder %s2535_s12, %s2624_s19 }
 0x485   : > { %p2007_p5 = scmp.lt.u32.totalorder %s2005_s18, %s2001_s1  ;;  %p2009_p6 = scmp.lt.u32.totalorder %s2001_s1, %s2535_s12 }
 0x486   : > { %p2003_p10 = pnand %p2002_p4, %p2625_p9 }
 0x487   : > { %p2008_p7 = por %p2007_p5, %p2006_p8 }
 0x488   : > { %p2004_p11 = pneg %p2003_p10 }
 0x489   : > { %p2010_p12 = por %p2009_p6, %p2008_p7 }
 0x48b   : > { %p2011_p1 = pnand %p2010_p12, %p2004_p11 }
 0x48d   : > { %2014 = shalt.err (!%p2011_p1)
}
 0x48e   : > { %1656 = dma.vmem_to_hbm [thread:$0]  (%p2625_p9), %s2537_s13, 128, %s2535_s12, %s1240_s14  }
 0x48f PF: > { %s1265_s29 = sand.u32 1, %s2053_s25   ;;  %p2626_p13 = scmp.ne.s32.totalorder %s2611_s24, 0 }
 0x490   : > { %p2627_p0 = scmp.ge.s32.totalorder %s2065_s28, 2  ;;  %s1266_s17 = scalar_lea.sflag [#allocation4], %s1265_s29 }
 0x492   : > { %p1682_p2 = pnand %p2627_p0, %p2626_p13 }
 0x494   : > { %2048 = dma.done.wait (!%p1682_p2), %s1266_s17, 128  }
 0x495   : > { %2050 = vsyncadd (!%p1682_p2), %s1266_s17, 4294967168  ;;  %p29_p3 = scmp.ge.s32.totalorder %s2343_s16, 4   ;;  %s2628_s25 = smov %s2057_s26 }
 0x496   : > { %s2629_s26 = smov %s2061_s27  ;;  %s2630_s27 = smov %s2354_s8 }
 0x497   : > { %s2631_s28 = smov %s2343_s16  ;;  %31 = sbr.rel (!%p29_p3) target bundleno = 15 (0xf), region = 141 }
 0x49e   :  { %1271 = vsyncpa [#allocation3], 1 }
 0x49f   :  { %1273 = vsyncpa [#allocation3 + $0x1], 1 }
 0x4a0   :  { %1274 = vsyncpa [#allocation6], 1 }
 0x4a1   :  { %1275 = vsyncpa [#allocation9], 1 }
 0x4a2   :  { %1276 = vsyncpa [#allocation12], 1 }
 0x4a3   :  { %1277 = vsyncpa [#allocation4], 1 }
 0x4a4   :  { %1279 = vsyncpa [#allocation4 + $0x1], 1 }

// kernel: tpu_custom_call.1
= control target key start
LH: loop header
LB: loop body
LE: loop exit
PB: predicated region body
PF: predicated region fallthrough
CT: control target
= control target key end

     0   :  { %s2579_s0 = inlined_call_operand.hbm [shape: f32[2,8,128], index: 0, kind: input, shape index: {}]   ;;  %s2580_s1 = inlined_call_operand.hbm [shape: bf16[128,128], index: 1, kind: input, shape index: {}]   ;;  %s2581_s2 = inlined_call_operand.vmem [shape: f32[1,128], index: 2, kind: input, shape index: {}]   ;;  %s2582_s3 = inlined_call_operand.hbm [shape: bf16[128,128], index: 3, kind: input, shape index: {}]   ;;  %s2583_s4 = inlined_call_operand.vmem [shape: f32[1,128], index: 4, kind: input, shape index: {}]   ;;  %s2584_s5 = inlined_call_operand.hbm [shape: bf16[128,128], index: 5, kind: input, shape index: {}]   ;;  %s2585_s6 = inlined_call_operand.vmem [shape: f32[1,128], index: 6, kind: input, shape index: {}]   ;;  %s2586_s7 = inlined_call_operand.hbm [shape: bf16[128,128], index: 7, kind: input, shape index: {}]   ;;  %s2587_s8 = inlined_call_operand.vmem [shape: f32[1,128], index: 8, kind: input, shape index: {}]   ;;  %s2588_s9 = inlined_call_operand.hbm [shape: bf16[128,128], index: 9, kind: input, shape index: {}]   ;;  %s2589_s10 = inlined_call_operand.vmem [shape: f32[1,128], index: 10, kind: input, shape index: {}]   ;;  %s2590_s11 = inlined_call_operand.hbm [shape: bf16[128,128], index: 11, kind: input, shape index: {}]   ;;  %s2591_s12 = inlined_call_operand.vmem [shape: f32[1,128], index: 12, kind: input, shape index: {}]   ;;  %s2592_s13 = inlined_call_operand.hbm [shape: f32[2,8,128], index: 13, kind: output, shape index: {}]  }
   0x1   :  { %2597 = sst [smem:[#allocation20_spill]] %s2580_s1 }
   0x2   :  { %2598 = sst [smem:[#allocation21_spill]] %s2583_s4 }
   0x3   :  { %2599 = sst [smem:[#allocation22_spill]] %s2587_s8 }
   0x4   :  { %2600 = sst [smem:[#allocation23_spill]] %s2589_s10 }
   0x5   :  { %2601 = sst [smem:[#allocation24_spill]] %s2591_s12 }
   0x6   :  { %2602 = sst [smem:[#allocation25_spill]] %s2592_s13 }
   0x7   :  { %18 = vsyncpa [#allocation3], 0 }
   0x8   :  { %20 = vsyncpa [#allocation3 + $0x1], 0 }
   0x9   :  { %21 = vsyncpa [#allocation6], 0 }
   0xa   :  { %22 = vsyncpa [#allocation9], 0 }
   0xb   :  { %23 = vsyncpa [#allocation12], 0 }
   0xc   :  { %24 = vsyncpa [#allocation4], 0 }
   0xd   :  { %26 = vsyncpa [#allocation4 + $0x1], 0  ;;  %s2149_s25 = smov 0   ;;  %s2151_s26 = smov 0  }
   0xe   :  { %s2153_s27 = smov 0   ;;  %s2155_s28 = smov 0  }
   0xf LB: > { %s2067_s29 = smov [#allocation5]   ;;  %s2170_s14 = sadd.s32 4294967295, %s2065_s28   ;;  %s2065_s28 = sphi %s2155_s28, %s2631_s28   ;;  %s2061_s27 = sphi %s2153_s27, %s2630_s27   ;;  %s2057_s26 = sphi %s2151_s26, %s2629_s26   ;;  %s2053_s25 = sphi %s2149_s25, %s2628_s25  }
  0x10   : > { %s353_s30 = sshll.u32 %s2067_s29, 4  ;;  %p1381_p0 = scmp.ge.s32.totalorder %s2065_s28, 1  ;;  %s2175_s30 = int_to_ptr.vmem [resolvable:$true] %s353_s30 }
  0x11   : > { %p2594_p1 = scmp.eq.s32.totalorder %s2170_s14, 0  ;;  %p341_p2 = scmp.lt.s32.totalorder %s2065_s28, 3 }
  0x12   : > { %s2068_s16 = smov [#allocation8]   ;;  %s2069_s19 = smov [#allocation11]  }
  0x13   : > { %p2177_p3 = pnand %p1381_p0, %p341_p2  ;;  %s385_s17 = sshll.u32 %s2068_s16, 4  ;;  %s2190_s17 = int_to_ptr.vmem [resolvable:$true] %s385_s17 }
  0x14   : > { %s417_s20 = sshll.u32 %s2069_s19, 4  ;;  %s2605_s1 = sld [smem:[#allocation20_spill]]  ;;  %s2192_s20 = int_to_ptr.vmem [resolvable:$true] %s417_s20 }
  0x15   : > { %s2603_s15 = scalar_select %p2177_p3, 1, 0 }
  0x16   : > { %p1658_p5 = pneg %p2177_p3 }
  0x18   : > { %p2186_p6 = pnand %p1658_p5, %p2594_p1 }
  0x1a   : > { %s1789_s23 = scalar_lea.hbm %s2605_s1, 1024  ;;  %p2202_p8 = pneg %p2186_p6 }
  0x1b   : > { %p1790_p7 = scmp.ne.s32.totalorder %s2605_s1, %s1789_s23  ;;  %p1796_p11 = scmp.lt.u32.totalorder %s1789_s23, %s2605_s1 }
  0x1d   : > { %p1792_p9 = pnand %p2202_p8, %p1790_p7 }
  0x1f   : > { %p1793_p10 = pneg %p1792_p9 }
  0x21   : > { %p1798_p12 = pnand %p1796_p11, %p1793_p10 }
  0x23   : > { %1801 = shalt.err (!%p1798_p12)
}
  0x24   : > { %s1802_s21 = scalar_lea.vmem %s2175_s30, 1024  ;;  %p1810_p5 = scmp.lt.s32.totalorder %s2175_s30, %s2175_s30 }
  0x25   : > { %p1803_p13 = scmp.ne.s32.totalorder %s2175_s30, %s1802_s21  ;;  %p1811_p4 = scmp.lt.s32.totalorder %s1802_s21, %s1802_s21 }
  0x27   : > { %p1805_p0 = pnand %p1803_p13, %p2202_p8  ;;  %p1812_p7 = por %p1811_p4, %p1810_p5 }
  0x29   : > { %p1806_p2 = pneg %p1805_p0 }
  0x2b   : > { %p1813_p9 = pnand %p1812_p7, %p1806_p2 }
  0x2d   : > { %1816 = shalt.err (!%p1813_p9)
}
  0x2e   : > { %s2070_s22 = smov 64   ;;  %s2071_s13 = smov 4  }
  0x2f   : > { %1661 = dma.hbm_to_vmem [thread:$0]  (!%p2186_p6), %s2605_s1, 1024, %s2175_s30, [#allocation6], %s2070_s22, %s2070_s22, %s2071_s13  }
  0x30   : > { %s1817_s21 = scalar_lea.hbm %s2584_s5, 1024 }
  0x31   : > { %p1818_p4 = scmp.ne.s32.totalorder %s2584_s5, %s1817_s21  ;;  %p1824_p12 = scmp.lt.u32.totalorder %s1817_s21, %s2584_s5 }
  0x33   : > { %p1820_p10 = pnand %p1818_p4, %p2202_p8 }
  0x35   : > { %p1821_p11 = pneg %p1820_p10 }
  0x37   : > { %p1826_p13 = pnand %p1824_p12, %p1821_p11 }
  0x39   : > { %1829 = shalt.err (!%p1826_p13)
}
  0x3a   : > { %s1830_s30 = scalar_lea.vmem %s2190_s17, 1024  ;;  %p1838_p7 = scmp.lt.s32.totalorder %s2190_s17, %s2190_s17 }
  0x3b   : > { %p1831_p0 = scmp.ne.s32.totalorder %s2190_s17, %s1830_s30  ;;  %p1839_p9 = scmp.lt.s32.totalorder %s1830_s30, %s1830_s30 }
  0x3d   : > { %p1833_p2 = pnand %p1831_p0, %p2202_p8  ;;  %p1840_p4 = por %p1839_p9, %p1838_p7 }
  0x3f   : > { %p1834_p5 = pneg %p1833_p2 }
  0x41   : > { %p1841_p10 = pnand %p1840_p4, %p1834_p5 }
  0x43   : > { %1844 = shalt.err (!%p1841_p10)
}
  0x44   : > { %1667 = dma.hbm_to_vmem [thread:$0]  (!%p2186_p6), %s2584_s5, 1024, %s2190_s17, [#allocation9], %s2070_s22, %s2070_s22, %s2071_s13  }
  0x45   : > { %s1845_s23 = scalar_lea.hbm %s2588_s9, 1024 }
  0x46   : > { %p1846_p11 = scmp.ne.s32.totalorder %s2588_s9, %s1845_s23  ;;  %p1852_p0 = scmp.lt.u32.totalorder %s1845_s23, %s2588_s9 }
  0x48   : > { %p1848_p12 = pnand %p1846_p11, %p2202_p8 }
  0x4a   : > { %p1849_p13 = pneg %p1848_p12 }
  0x4c   : > { %p1854_p2 = pnand %p1852_p0, %p1849_p13 }
  0x4e   : > { %1857 = shalt.err (!%p1854_p2)
}
  0x4f   : > { %s1858_s17 = scalar_lea.vmem %s2192_s20, 1024  ;;  %p1866_p4 = scmp.lt.s32.totalorder %s2192_s20, %s2192_s20 }
  0x50   : > { %p1859_p5 = scmp.ne.s32.totalorder %s2192_s20, %s1858_s17  ;;  %p1867_p10 = scmp.lt.s32.totalorder %s1858_s17, %s1858_s17 }
  0x52   : > { %p1861_p7 = pnand %p1859_p5, %p2202_p8  ;;  %p1868_p11 = por %p1867_p10, %p1866_p4 }
  0x54   : > { %p1862_p9 = pneg %p1861_p7 }
  0x56   : > { %p1869_p12 = pnand %p1868_p11, %p1862_p9 }
  0x58   : > { %1872 = shalt.err (!%p1869_p12)
}
  0x59   : > { %1673 = dma.hbm_to_vmem [thread:$0]  (!%p2186_p6), %s2588_s9, 1024, %s2192_s20, [#allocation12], %s2070_s22, %s2070_s22, %s2071_s13  }
  0x5a   : > { %s2072_s8 = smov [#allocation7]   ;;  %s2073_s12 = smov [#allocation10]  }
  0x5b   : > { %s369_s10 = sshll.u32 %s2072_s8, 4  ;;  %s401_s23 = sshll.u32 %s2073_s12, 4  ;;  %s370_s10 = int_to_ptr.vmem [resolvable:$true] %s369_s10  ;;  %s402_s23 = int_to_ptr.vmem [resolvable:$true] %s401_s23 }
  0x5c   : > { %s1873_s19 = scalar_lea.hbm %s2582_s3, 1024 }
  0x5d   : > { %p1874_p13 = scmp.ne.s32.totalorder %s2582_s3, %s1873_s19  ;;  %p1880_p5 = scmp.lt.u32.totalorder %s1873_s19, %s2582_s3 }
  0x5f   : > { %p1876_p0 = pnand %p1874_p13, %p2202_p8 }
  0x61   : > { %p1877_p2 = pneg %p1876_p0 }
  0x63   : > { %p1882_p7 = pnand %p1880_p5, %p1877_p2 }
  0x65   : > { %1885 = shalt.err (!%p1882_p7)
}
  0x66   : > { %s1886_s20 = scalar_lea.vmem %s370_s10, 1024  ;;  %p1894_p11 = scmp.lt.s32.totalorder %s370_s10, %s370_s10 }
  0x67   : > { %p1887_p9 = scmp.ne.s32.totalorder %s370_s10, %s1886_s20  ;;  %p1895_p12 = scmp.lt.s32.totalorder %s1886_s20, %s1886_s20 }
  0x69   : > { %p1889_p4 = pnand %p1887_p9, %p2202_p8  ;;  %p1896_p1 = por %p1895_p12, %p1894_p11 }
  0x6b   : > { %p1890_p10 = pneg %p1889_p4 }
  0x6d   : > { %p1897_p3 = pnand %p1896_p1, %p1890_p10 }
  0x6f   : > { %1900 = shalt.err (!%p1897_p3)
}
  0x70   : > { %1664 = dma.hbm_to_vmem [thread:$0]  (!%p2186_p6), %s2582_s3, 1024, %s370_s10, [#allocation6], %s2070_s22, %s2070_s22, %s2071_s13  }
  0x71   : > { %s1901_s24 = scalar_lea.hbm %s2586_s7, 1024 }
  0x72   : > { %p1902_p1 = scmp.ne.s32.totalorder %s2586_s7, %s1901_s24  ;;  %p1908_p0 = scmp.lt.u32.totalorder %s1901_s24, %s2586_s7 }
  0x74   : > { %p1904_p3 = pnand %p1902_p1, %p2202_p8 }
  0x76   : > { %p1905_p13 = pneg %p1904_p3 }
  0x78   : > { %p1910_p2 = pnand %p1908_p0, %p1905_p13 }
  0x7a   : > { %1913 = shalt.err (!%p1910_p2)
}
  0x7b   : > { %s1914_s30 = scalar_lea.vmem %s402_s23, 1024  ;;  %p1922_p4 = scmp.lt.s32.totalorder %s402_s23, %s402_s23 }
  0x7c   : > { %p1915_p5 = scmp.ne.s32.totalorder %s402_s23, %s1914_s30  ;;  %p1923_p10 = scmp.lt.s32.totalorder %s1914_s30, %s1914_s30 }
  0x7e   : > { %p1917_p7 = pnand %p1915_p5, %p2202_p8  ;;  %p1924_p11 = por %p1923_p10, %p1922_p4 }
  0x80   : > { %p1918_p9 = pneg %p1917_p7 }
  0x82   : > { %p1925_p12 = pnand %p1924_p11, %p1918_p9 }
  0x84   : > { %1928 = shalt.err (!%p1925_p12)
}
  0x85   : > { %1670 = dma.hbm_to_vmem [thread:$0]  (!%p2186_p6), %s2586_s7, 1024, %s402_s23, [#allocation9], %s2070_s22, %s2070_s22, %s2071_s13  }
  0x86   : > { %s2074_s1 = smov [#allocation13]   ;;  %s1929_s24 = scalar_lea.hbm %s2590_s11, 1024 }
  0x87   : > { %s433_s4 = sshll.u32 %s2074_s1, 4  ;;  %p1930_p1 = scmp.ne.s32.totalorder %s2590_s11, %s1929_s24  ;;  %s434_s4 = int_to_ptr.vmem [resolvable:$true] %s433_s4 }
  0x88   : > { %p1936_p0 = scmp.lt.u32.totalorder %s1929_s24, %s2590_s11 }
  0x89   : > { %p1932_p3 = pnand %p1930_p1, %p2202_p8 }
  0x8b   : > { %p1933_p13 = pneg %p1932_p3 }
  0x8d   : > { %p1938_p2 = pnand %p1936_p0, %p1933_p13 }
  0x8f   : > { %1941 = shalt.err (!%p1938_p2)
}
  0x90   : > { %s1942_s23 = scalar_lea.vmem %s434_s4, 1024  ;;  %p1950_p4 = scmp.lt.s32.totalorder %s434_s4, %s434_s4 }
  0x91   : > { %p1943_p5 = scmp.ne.s32.totalorder %s434_s4, %s1942_s23  ;;  %p1951_p10 = scmp.lt.s32.totalorder %s1942_s23, %s1942_s23 }
  0x93   : > { %p1945_p7 = pnand %p1943_p5, %p2202_p8  ;;  %p1952_p11 = por %p1951_p10, %p1950_p4 }
  0x95   : > { %p1946_p9 = pneg %p1945_p7 }
  0x97   : > { %p1953_p12 = pnand %p1952_p11, %p1946_p9 }
  0x99   : > { %1956 = shalt.err (!%p1953_p12)
}
  0x9a   : > { %1676 = dma.hbm_to_vmem [thread:$0]  (!%p2186_p6), %s2590_s11, 1024, %s434_s4, [#allocation12], %s2070_s22, %s2070_s22, %s2071_s13  }
  0x9b   : > { %s1380_s18 = sadd.s32 4294967294, %s2065_s28   ;;  %s2343_s16 = sadd.s32 1, %s2065_s28  }
  0x9c   : > { %s36_s20 = ssub.s32 %s2065_s28, %s2343_s16  ;;  %s39_s1 = sadd.s32 1, %s2061_s27 }
  0x9d   : > { %p37_p8 = scmp.eq.s32.totalorder %s36_s20, 0  ;;  %p46_p1 = scmp.ne.s32.totalorder %s2061_s27, %s2057_s26 }
  0x9e   : > { %p47_p3 = scmp.eq.s32.totalorder %s2065_s28, 0  ;;  %p52_p13 = scmp.ne.s32.totalorder %s2057_s26, %s2053_s25 }
  0x9f   : > { %s2354_s8 = scalar_select %p37_p8, %s2061_s27, %s39_s1  }
  0xa0   : > { %p2356_p0 = por %p47_p3, %p46_p1  ;;  %p2608_p2 = scmp.eq.s32.totalorder %s2170_s14, 0 }
  0xa1   : > { %p328_p5 = scmp.eq.s32.totalorder %s2170_s14, 1  ;;  %p334_p7 = scmp.eq.s32.totalorder %s1380_s18, 1 }
  0xa2   : > { %p2362_p6 = por %p2608_p2, %p52_p13  ;;  %p1691_p9 = scmp.lt.s32.totalorder %s2065_s28, 2 }
  0xa3   : > { %s450_s13 = sand.u32 1, %s2061_s27   ;;  %p2369_p4 = por %p328_p5, %p46_p1 }
  0xa4   : > { %p2373_p10 = por %p334_p7, %p52_p13  ;;  %s1389_s29 = sshll.u32 %s450_s13, 3 }
  0xa5   : > { %s2610_s4 = scalar_select %p2369_p4, 1, 0 }
  0xa6   : > { %s2611_s24 = scalar_select %p2373_p10, 1, 0 }
  0xa7   : > { %s1390_s19 = sshll.u32 %s2065_s28, 7  ;;  %s454_s30 = scalar_lea.vmem [#allocation2], %s1389_s29 }
  0xa8   : > { %s2381_s23 = scalar_lea.hbm %s2579_s0, %s1390_s19  ;;  %s461_s10 = sshll.u32 %s454_s30, 4  ;;  %s2383_s10 = int_to_ptr.vmem [resolvable:$true] %s461_s10 }
  0xa9   : > { %p2387_p11 = pnand %p1691_p9, %p2356_p0  ;;  %s451_s20 = scalar_lea.sflag [#allocation3], %s450_s13 }
  0xaa   : > { %s1957_s1 = scalar_lea.hbm %s2381_s23, 128  ;;  %s1962_s21 = scalar_lea.hbm %s2579_s0, 256 }
  0xab   : > { %p1958_p12 = scmp.ne.s32.totalorder %s2381_s23, %s1957_s1  ;;  %p1959_p8 = pneg %p2387_p11 }
  0xac   : > { %p1963_p13 = scmp.lt.u32.totalorder %s2381_s23, %s2579_s0  ;;  %p1964_p0 = scmp.lt.u32.totalorder %s1962_s21, %s1957_s1 }
  0xad   : > { %p1960_p1 = pnand %p1959_p8, %p1958_p12  ;;  %p1966_p5 = scmp.lt.u32.totalorder %s1957_s1, %s2381_s23 }
  0xae   : > { %p1965_p2 = por %p1964_p0, %p1963_p13 }
  0xaf   : > { %p1961_p3 = pneg %p1960_p1 }
  0xb0   : > { %p1967_p7 = por %p1966_p5, %p1965_p2 }
  0xb2   : > { %p1968_p9 = pnand %p1967_p7, %p1961_p3 }
  0xb4   : > { %1971 = shalt.err (!%p1968_p9)
}
  0xb5   : > { %s1972_s13 = scalar_lea.vmem %s2383_s10, 128  ;;  %s2075_s30 = smov [#allocation2]  }
  0xb6   : > { %p1973_p12 = scmp.ne.s32.totalorder %s2383_s10, %s1972_s13  ;;  %s1977_s29 = sshll.u32 %s2075_s30, 4  ;;  %s1978_s29 = int_to_ptr.vmem [resolvable:$false] %s1977_s29 }
  0xb7   : > { %s1979_s19 = scalar_lea.vmem %s1978_s29, 256  ;;  %p1980_p4 = scmp.lt.s32.totalorder %s2383_s10, %s1978_s29 }
  0xb8   : > { %p1975_p1 = pnand %p1973_p12, %p1959_p8  ;;  %p1981_p13 = scmp.lt.s32.totalorder %s1979_s19, %s1972_s13 }
  0xba   : > { %p1976_p10 = pneg %p1975_p1  ;;  %p1982_p0 = por %p1981_p13, %p1980_p4 }
  0xbc   : > { %p1983_p2 = pnand %p1982_p0, %p1976_p10 }
  0xbe   : > { %1986 = shalt.err (!%p1983_p2)
}
  0xbf   : > { %1680 = dma.hbm_to_vmem [thread:$0]  (!%p2387_p11), %s2381_s23, 128, %s2383_s10, %s451_s20  }
  0xc0   : > { %p2613_p3 = scmp.ne.s32.totalorder %s2603_s15, 0 }
  0xc1   : > { %s2419_s1 = sand.u32 (!%p2613_p3), 1, %s2057_s26  }
  0xc2   : > { %470 = sbr.rel (%p2613_p3) target bundleno = 1167 (0x48f), region = 72  ;;  %s1392_s21 = sshll.u32 (!%p2613_p3), %s2419_s1, 3 }
  0xc3   : > { %s473_s12 = scalar_lea.sflag (!%p2613_p3), [#allocation3], %s2419_s1  ;;  %s2425_s17 = scalar_lea.vmem (!%p2613_p3), [#allocation2], %s1392_s21 }
  0xc9   : > { %2032 = dma.done.wait (%p2362_p6), %s473_s12, 128  }
  0xca   : > { %2034 = vsyncadd (%p2362_p6), %s473_s12, 4294967168  ;;  %p2614_p4 = scmp.eq.s32.totalorder %s2170_s14, 0 }
  0xcc   : > { %2036 = dma.done.wait (%p2614_p4), [#allocation6], 2048   ;;  %p2615_p10 = pmov %p2614_p4 }
  0xcd   : > { %p2616_p11 = pmov %p2614_p4 }
  0xce   : > { %2038 = vsyncadd (%p2615_p10), [#allocation6], 4294965248 }
  0xcf   : > { %2040 = dma.done.wait (%p2616_p11), [#allocation9], 2048   ;;  %p2617_p8 = pmov %p2614_p4 }
  0xd0   : > { %p2618_p5 = pmov %p2614_p4 }
  0xd1   : > { %2042 = vsyncadd (%p2617_p8), [#allocation9], 4294965248 }
  0xd2   : > { %2044 = dma.done.wait (%p2618_p5), [#allocation12], 2048   ;;  %p2619_p7 = pmov %p2614_p4 }
  0xd3   : > { %v2076_v0 = vmov 0.0   ;;  %vm2077_vm0 = vmmov 0   ;;  %v1741_v1 = vld [vmem:[#allocation5] sm:$0xff]   ;;  %v1742_v2 = vld [vmem:[#allocation5 + $0x8] sm:$0xff]   ;;  %v1743_v3 = vld [vmem:[#allocation5 + $0x10] sm:$0xff]   ;;  %v885_v63 = vlaneseq  ;;  %s2620_s13 = sld [smem:[#allocation21_spill]] }
  0xd4   : > { %2046 = vsyncadd (%p2619_p7), [#allocation12], 4294965248  ;;  %1510 = vmatprep.subr.bf16.mxu0 %v2076_v0  ;;  %1526 = vmatprep.mubr.msk.bf16.mxu0 %vm2077_vm0, %v2076_v0  ;;  %v1749_v4 = vld [vmem:[#allocation7] sm:$0xff]   ;;  %v1744_v5 = vld [vmem:[#allocation5 + $0x18] sm:$0xff]   ;;  %s2621_s19 = sld [smem:[#allocation23_spill]]  ;;  %s2622_s15 = sld [smem:[#allocation22_spill]] }
  0xd5   : > { %1530 = vmatprep.subr.bf16.mxu1 %v2076_v0  ;;  %1546 = vmatprep.mubr.msk.bf16.mxu1 %vm2077_vm0, %v2076_v0  ;;  %v1750_v6 = vld [vmem:[#allocation7 + $0x8] sm:$0xff]   ;;  %v1745_v7 = vld [vmem:[#allocation5 + $0x20] sm:$0xff]   ;;  %v1751_v8 = vld [vmem:[#allocation7 + $0x10] sm:$0xff]   ;;  %s2623_s10 = sld [smem:[#allocation24_spill]]  ;;  %s1453_s18 = sshll.u32 %s2170_s14, 7 }
  0xd6   : > { %1511 = vmatpush3.bf16.msra.mxu0 %v1741_v1  ;;  %1531 = vmatpush3.bf16.msra.mxu1 %v1749_v4  ;;  %v1746_v9 = vld [vmem:[#allocation5 + $0x28] sm:$0xff]   ;;  %v1752_v10 = vld [vmem:[#allocation7 + $0x18] sm:$0xff]   ;;  %v1747_v11 = vld [vmem:[#allocation5 + $0x30] sm:$0xff]   ;;  %v886_v1 = vshrl.u32 %v885_v63, 7  ;;  %s542_s20 = scalar_lea.vmem [#allocation14], %s1392_s21  ;;  %s1240_s14 = scalar_lea.sflag [#allocation4], %s2419_s1 }
  0xd7   : > { %1512 = vmatprep.subr.bf16.mxu0 %v2076_v0  ;;  %1532 = vmatprep.subr.bf16.mxu1 %v2076_v0  ;;  %v1754_v12 = vld [vmem:[#allocation7 + $0x20] sm:$0xff]   ;;  %v1748_v13 = vld [vmem:[#allocation5 + $0x38] sm:$0xff]   ;;  %v1756_v15 = vld [vmem:[#allocation7 + $0x28] sm:$0xff]   ;;  %p2625_p9 = scmp.ne.s32.totalorder %s2610_s4, 0  ;;  %s2078_s21 = smov [#allocation14]  }
  0xd8   : > { %v544_v14 = vld [vmem:[%s2425_s17] sm:$0xff]  ;;  %v1753_v16 = vld [vmem:[#allocation8] sm:$0xff]   ;;  %v1755_v18 = vld [vmem:[#allocation8 + $0x8] sm:$0xff]  }
  0xd9   : > { %v562_v17 = vpack.c.bf16 %v544_v14, %v544_v14  ;;  %v1757_v19 = vld [vmem:[#allocation8 + $0x10] sm:$0xff]   ;;  %v1759_v21 = vld [vmem:[#allocation8 + $0x18] sm:$0xff]   ;;  %v1761_v23 = vld [vmem:[#allocation8 + $0x20] sm:$0xff]  }
  0xda   : > { %1513 = vmatpush3.bf16.msra.mxu0 %v1742_v2  ;;  %1533 = vmatpush3.bf16.msra.mxu1 %v1750_v6  ;;  %v1758_v20 = vld [vmem:[#allocation7 + $0x30] sm:$0xff]   ;;  %v1760_v22 = vld [vmem:[#allocation7 + $0x38] sm:$0xff]   ;;  %v1762_v24 = vld [vmem:[#allocation8 + $0x28] sm:$0xff]  }
  0xdb   : > { %1514 = vmatprep.subr.bf16.mxu0 %v2076_v0  ;;  %1534 = vmatprep.subr.bf16.mxu1 %v2076_v0  ;;  %v1763_v25 = vld [vmem:[#allocation8 + $0x30] sm:$0xff]   ;;  %v1764_v26 = vld [vmem:[#allocation8 + $0x38] sm:$0xff]   ;;  %v1765_v34 = vld [vmem:[#allocation10] sm:$0xff]  }
  0xdc   : > { %v1408_v27 = vld [vmem:[%s2581_s2] ss:$0 sm:$0xff]  ;;  %v1766_v44 = vld [vmem:[#allocation10 + $0x8] sm:$0xff]   ;;  %v1769_v46 = vld [vmem:[#allocation11] sm:$0xff]  }
  0xdd   : > { %v1767_v45 = vld [vmem:[#allocation10 + $0x10] sm:$0xff]   ;;  %v1768_v47 = vld [vmem:[#allocation10 + $0x18] sm:$0xff]   ;;  %v1770_v48 = vld [vmem:[#allocation10 + $0x20] sm:$0xff]  }
  0xde   : > { %1515 = vmatpush3.bf16.msra.mxu0 %v1743_v3  ;;  %1535 = vmatpush3.bf16.msra.mxu1 %v1751_v8  ;;  %v1771_v49 = vld [vmem:[#allocation11 + $0x8] sm:$0xff]   ;;  %v1773_v51 = vld [vmem:[#allocation11 + $0x10] sm:$0xff]   ;;  %v1775_v53 = vld [vmem:[#allocation11 + $0x18] sm:$0xff]   ;;  %v887_v3 = vsub.s32 0, %v886_v1 }
  0xdf   : > { %1516 = vmatprep.subr.bf16.mxu0 %v2076_v0  ;;  %1536 = vmatprep.subr.bf16.mxu1 %v2076_v0  ;;  %v1772_v50 = vld [vmem:[#allocation10 + $0x28] sm:$0xff]   ;;  %v1774_v52 = vld [vmem:[#allocation10 + $0x30] sm:$0xff]   ;;  %v1776_v54 = vld [vmem:[#allocation10 + $0x38] sm:$0xff]  }
  0xe0   : > { %v1777_v55 = vld [vmem:[#allocation11 + $0x20] sm:$0xff]   ;;  %v1778_v56 = vld [vmem:[#allocation11 + $0x28] sm:$0xff]   ;;  %v1779_v57 = vld [vmem:[#allocation11 + $0x30] sm:$0xff]  }
  0xe1   : > { %v1780_v58 = vld [vmem:[#allocation11 + $0x38] sm:$0xff]   ;;  %v692_v2 = vld [vmem:[%s2585_s6] sm:$0x1] }
  0xe2   : > { %1517 = vmatpush3.bf16.msra.mxu0 %v1744_v5  ;;  %1537 = vmatpush3.bf16.msra.mxu1 %v1752_v10  ;;  %v1417_v4 = vld [vmem:[%s2620_s13] ss:$0 sm:$0xff]  ;;  %s1253_s13 = sshll.u32 %s542_s20, 4  ;;  %s2537_s13 = int_to_ptr.vmem [resolvable:$true] %s1253_s13 }
  0xe3   : > { %1518 = vmatprep.subr.bf16.mxu0 %v2076_v0  ;;  %1538 = vmatprep.subr.bf16.mxu1 %v2076_v0  ;;  %s1987_s17 = scalar_lea.vmem %s2537_s13, 128 }
  0xe4   : > { %p1988_p6 = scmp.ne.s32.totalorder %s2537_s13, %s1987_s17 }
  0xe6   : > { %1519 = vmatpush3.bf16.msra.mxu0 %v1745_v7  ;;  %1539 = vmatpush3.bf16.msra.mxu1 %v1754_v12  ;;  %p1989_p12 = pnand %p1988_p6, %p2625_p9 }
  0xe7   : > { %1520 = vmatprep.subr.bf16.mxu0 %v2076_v0  ;;  %1540 = vmatprep.subr.bf16.mxu1 %v2076_v0 }
  0xe8   : > { %p1990_p1 = pneg %p1989_p12 }
  0xea   : > { %1521 = vmatpush3.bf16.msra.mxu0 %v1746_v9  ;;  %1541 = vmatpush3.bf16.msra.mxu1 %v1756_v15  ;;  %v1781_v15 = vld [vmem:[#allocation13] sm:$0xff]  }
  0xeb   : > { %1522 = vmatprep.subr.bf16.mxu0 %v2076_v0  ;;  %1542 = vmatprep.subr.bf16.mxu1 %v2076_v0 }
  0xee   : > { %1523 = vmatpush3.bf16.msra.mxu0 %v1747_v11  ;;  %1543 = vmatpush3.bf16.msra.mxu1 %v1758_v20 }
  0xef   : > { %1524 = vmatprep.subr.bf16.mxu0 %v2076_v0  ;;  %1544 = vmatprep.subr.bf16.mxu1 %v2076_v0 }
  0xf2   : > { %1525 = vmatpush3.bf16.msra.mxu0 %v1748_v13  ;;  %1545 = vmatpush3.bf16.msra.mxu1 %v1760_v22 }
  0xf3   : > { %1550 = vmatprep.subr.bf16.mxu0 %v2076_v0  ;;  %1570 = vmatprep.subr.bf16.mxu1 %v2076_v0 }
  0xf5   : > { %1527 = vmatmul.mubr.bf16.vlgmr.msra.gmra.mrb[0].mxu0 %v562_v17 }
  0xf6   : > { %1551 = vmatpush3.bf16.msra.mxu0 %v1753_v16  ;;  %1566 = vmatprep.mubr.msk.bf16.mxu0 %vm2077_vm0, %v2076_v0 }
  0xf7   : > { %1552 = vmatprep.subr.bf16.mxu0 %v2076_v0 }
  0xfa   : > { %1553 = vmatpush3.bf16.msra.mxu0 %v1755_v18 }
  0xfb   : > { %1554 = vmatprep.subr.bf16.mxu0 %v2076_v0 }
  0xfe   : > { %1555 = vmatpush3.bf16.msra.mxu0 %v1757_v19 }
  0xff   : > { %1556 = vmatprep.subr.bf16.mxu0 %v2076_v0 }
 0x102   : > { %1557 = vmatpush3.bf16.msra.mxu0 %v1759_v21 }
 0x103   : > { %1558 = vmatprep.subr.bf16.mxu0 %v2076_v0 }
 0x106   : > { %1559 = vmatpush3.bf16.msra.mxu0 %v1761_v23 }
 0x107   : > { %1560 = vmatprep.subr.bf16.mxu0 %v2076_v0 }
 0x10a   : > { %1561 = vmatpush3.bf16.msra.mxu0 %v1762_v24 }
 0x10b   : > { %1562 = vmatprep.subr.bf16.mxu0 %v2076_v0 }
 0x10e   : > { %1563 = vmatpush3.bf16.msra.mxu0 %v1763_v25  ;;  %v1782_v25 = vld [vmem:[#allocation13 + $0x8] sm:$0xff]  }
 0x10f   : > { %1564 = vmatprep.subr.bf16.mxu0 %v2076_v0 }
 0x112   : > { %1565 = vmatpush3.bf16.msra.mxu0 %v1764_v26  ;;  %v1783_v26 = vld [vmem:[#allocation13 + $0x10] sm:$0xff]  }
 0x113   : > { %1590 = vmatprep.subr.bf16.mxu0 %v2076_v0 }
 0x1c8   : > { %v645_v28 = vpop.f32.mrb[0].mxu0 }
 0x1c9   : > { %v657_v29 = vadd.f32 %v1408_v27, %v645_v28  ;;  %v1528_v30 = vpop.f32.mrb[1].mxu0  ;;  %v1784_v27 = vld [vmem:[#allocation13 + $0x18] sm:$0xff]   ;;  %v1785_v28 = vld [vmem:[#allocation13 + $0x20] sm:$0xff]  }
 0x1ca   : > { %v648_v31 = vpop.f32.mrb[2].mxu0  ;;  %v1787_v30 = vld [vmem:[#allocation13 + $0x30] sm:$0xff]  }
 0x1cb   : > { %v2479_v32 = vmax.f32 %v657_v29, 0.0  ;;  %v1529_v33 = vpop.f32.mrb[3].mxu0  ;;  %v1786_v29 = vld [vmem:[#allocation13 + $0x28] sm:$0xff]   ;;  %v1788_v31 = vld [vmem:[#allocation13 + $0x38] sm:$0xff]  }
 0x1cd   : > { %v789_v35 = vrot.slane %v2479_v32, 4  ;;  %v693_v36 = vpack.c.bf16 %v2479_v32, %v2479_v32 }
 0x1cf   : > { %v790_v37 = vadd.f32 %v789_v35, %v2479_v32  ;;  %1547 = vmatmul.mubr.bf16.vlgmr.msra.gmra.mrb[0].mxu1 %v693_v36  ;;  %v925_v36 = vld [vmem:[%s2621_s19] sm:$0x1]  ;;  %s2624_s19 = sld [smem:[#allocation25_spill]] }
 0x1d0   : > { %1571 = vmatpush3.bf16.msra.mxu1 %v1765_v34  ;;  %1586 = vmatprep.mubr.msk.bf16.mxu1 %vm2077_vm0, %v2076_v0 }
 0x1d1   : > { %v791_v38 = vrot.slane %v790_v37, 2  ;;  %1572 = vmatprep.subr.bf16.mxu1 %v2076_v0 }
 0x1d3   : > { %v792_v39 = vadd.f32 %v791_v38, %v790_v37  ;;  %v1434_v37 = vld [vmem:[%s2622_s15] ss:$0 sm:$0xff]  ;;  %s1991_s15 = sshll.u32 %s2078_s21, 4  ;;  %s1992_s15 = int_to_ptr.vmem [resolvable:$false] %s1991_s15 }
 0x1d4   : > { %1573 = vmatpush3.bf16.msra.mxu1 %v1766_v44  ;;  %s1993_s22 = scalar_lea.vmem %s1992_s15, 256  ;;  %p1994_p13 = scmp.lt.s32.totalorder %s2537_s13, %s1992_s15 }
 0x1d5   : > { %v793_v40 = vrot.slane %v792_v39, 1  ;;  %1574 = vmatprep.subr.bf16.mxu1 %v2076_v0  ;;  %s2535_s12 = scalar_lea.hbm %s2624_s19, %s1453_s18  ;;  %p1995_p0 = scmp.lt.s32.totalorder %s1993_s22, %s1987_s17 }
 0x1d7   : > { %v794_v41 = vadd.f32 %v793_v40, %v792_v39  ;;  %p1996_p2 = por %p1995_p0, %p1994_p13 }
 0x1d8   : > { %1575 = vmatpush3.bf16.msra.mxu1 %v1767_v45 }
 0x1d9   : > { %v795_v42 = vmul.f32 0.125, %v794_v41  ;;  %1576 = vmatprep.subr.bf16.mxu1 %v2076_v0  ;;  %p1997_p3 = pnand %p1996_p2, %p1990_p1 }
 0x1db   : > { %v796_v43 = vpack.c.bf16 %v795_v42, %v795_v42 }
 0x1dc   : > { %1577 = vmatpush3.bf16.msra.mxu1 %v1768_v47 }
 0x1dd   : > { %1567 = vmatmul.mubr.bf16.vlgmr.msra.gmra.mrb[4].mxu0 %v796_v43  ;;  %1578 = vmatprep.subr.bf16.mxu1 %v2076_v0 }
 0x1de   : > { %1606 = vmatprep.mubr.msk.bf16.mxu0 %vm2077_vm0, %v2076_v0  ;;  %1591 = vmatpush3.bf16.msra.mxu0 %v1769_v46 }
 0x1df   : > { %1592 = vmatprep.subr.bf16.mxu0 %v2076_v0 }
 0x1e0   : > { %1579 = vmatpush3.bf16.msra.mxu1 %v1770_v48  ;;  %v1451_v48 = vld [vmem:[%s2623_s10] ss:$0 sm:$0xff] }
 0x1e1   : > { %1580 = vmatprep.subr.bf16.mxu1 %v2076_v0 }
 0x1e2   : > { %1593 = vmatpush3.bf16.msra.mxu0 %v1771_v49 }
 0x1e3   : > { %1594 = vmatprep.subr.bf16.mxu0 %v2076_v0 }
 0x1e4   : > { %1581 = vmatpush3.bf16.msra.mxu1 %v1772_v50 }
 0x1e5   : > { %1582 = vmatprep.subr.bf16.mxu1 %v2076_v0 }
 0x1e6   : > { %1595 = vmatpush3.bf16.msra.mxu0 %v1773_v51 }
 0x1e7   : > { %1596 = vmatprep.subr.bf16.mxu0 %v2076_v0 }
 0x1e8   : > { %1583 = vmatpush3.bf16.msra.mxu1 %v1774_v52 }
 0x1e9   : > { %1584 = vmatprep.subr.bf16.mxu1 %v2076_v0 }
 0x1ea   : > { %1597 = vmatpush3.bf16.msra.mxu0 %v1775_v53 }
 0x1eb   : > { %1598 = vmatprep.subr.bf16.mxu0 %v2076_v0 }
 0x1ec   : > { %1585 = vmatpush3.bf16.msra.mxu1 %v1776_v54 }
 0x1ed   : > { %1610 = vmatprep.subr.bf16.mxu1 %v2076_v0 }
 0x1ee   : > { %1599 = vmatpush3.bf16.msra.mxu0 %v1777_v55 }
 0x1ef   : > { %1600 = vmatprep.subr.bf16.mxu0 %v2076_v0 }
 0x1f2   : > { %1601 = vmatpush3.bf16.msra.mxu0 %v1778_v56 }
 0x1f3   : > { %1602 = vmatprep.subr.bf16.mxu0 %v2076_v0 }
 0x1f6   : > { %1603 = vmatpush3.bf16.msra.mxu0 %v1779_v57 }
 0x1f7   : > { %1604 = vmatprep.subr.bf16.mxu0 %v2076_v0 }
 0x1fa   : > { %1605 = vmatpush3.bf16.msra.mxu0 %v1780_v58 }
 0x2a2   : > { %v776_v59 = vpop.f32.mrb[0].mxu1 }
 0x2a3   : > { %v1548_v60 = vpop.f32.mrb[1].mxu1  ;;  %v788_v9 = vadd.f32 %v1417_v4, %v776_v59 }
 0x2a4   : > { %v779_v61 = vpop.f32.mrb[2].mxu1 }
 0x2a5   : > { %v1549_v62 = vpop.f32.mrb[3].mxu1 }
 0x2b0   : > { %v879_v5 = vpop.f32.mrb[4].mxu0 }
 0x2b1   : > { %v880_v6 = vadd.f32 %v879_v5, %v692_v2  ;;  %v1568_v7 = vpop.f32.mrb[5].mxu0 }
 0x2b2   : > { %v882_v8 = vpop.f32.mrb[6].mxu0 }
 0x2b3   : > { %v888_v10 = vrot.slane %v880_v6, %v887_v3  ;;  %v1569_v11 = vpop.f32.mrb[7].mxu0 }
 0x2b5   : > { %v889_v12 = vadd.f32 %v888_v10, %v788_v9 }
 0x2b7   : > { %v890_v13 = vmax.f32 %v889_v12, 0.0 }
 0x2b9   : > { %v891_v14 = vadd.f32 %v890_v13, %v2479_v32 }
 0x2bb   : > { %v926_v16 = vpack.c.bf16 %v891_v14, %v891_v14  ;;  %v1022_v17 = vrot.slane %v891_v14, 4 }
 0x2bd   : > { %1587 = vmatmul.mubr.bf16.vlgmr.msra.gmra.mrb[4].mxu1 %v926_v16  ;;  %v1023_v18 = vadd.f32 %v1022_v17, %v891_v14 }
 0x2be   : > { %1611 = vmatpush3.bf16.msra.mxu1 %v1781_v15  ;;  %1626 = vmatprep.mubr.msk.bf16.mxu1 %vm2077_vm0, %v2076_v0 }
 0x2bf   : > { %v1024_v19 = vrot.slane %v1023_v18, 2  ;;  %1612 = vmatprep.subr.bf16.mxu1 %v2076_v0 }
 0x2c1   : > { %v1025_v20 = vadd.f32 %v1024_v19, %v1023_v18 }
 0x2c2   : > { %1613 = vmatpush3.bf16.msra.mxu1 %v1782_v25 }
 0x2c3   : > { %v1026_v21 = vrot.slane %v1025_v20, 1  ;;  %1614 = vmatprep.subr.bf16.mxu1 %v2076_v0 }
 0x2c5   : > { %v1027_v22 = vadd.f32 %v1026_v21, %v1025_v20 }
 0x2c6   : > { %1615 = vmatpush3.bf16.msra.mxu1 %v1783_v26 }
 0x2c7   : > { %v1028_v23 = vmul.f32 0.125, %v1027_v22  ;;  %1616 = vmatprep.subr.bf16.mxu1 %v2076_v0 }
 0x2c9   : > { %v1029_v24 = vpack.c.bf16 %v1028_v23, %v1028_v23 }
 0x2ca   : > { %1617 = vmatpush3.bf16.msra.mxu1 %v1784_v27 }
 0x2cb   : > { %1607 = vmatmul.mubr.bf16.vlgmr.msra.gmra.mrb[8].mxu0 %v1029_v24  ;;  %1618 = vmatprep.subr.bf16.mxu1 %v2076_v0 }
 0x2ce   : > { %1619 = vmatpush3.bf16.msra.mxu1 %v1785_v28 }
 0x2cf   : > { %1620 = vmatprep.subr.bf16.mxu1 %v2076_v0 }
 0x2d2   : > { %1621 = vmatpush3.bf16.msra.mxu1 %v1786_v29 }
 0x2d3   : > { %1622 = vmatprep.subr.bf16.mxu1 %v2076_v0 }
 0x2d6   : > { %1623 = vmatpush3.bf16.msra.mxu1 %v1787_v30 }
 0x2d7   : > { %1624 = vmatprep.subr.bf16.mxu1 %v2076_v0 }
 0x2da   : > { %1625 = vmatpush3.bf16.msra.mxu1 %v1788_v31 }
 0x390   : > { %v1009_v32 = vpop.f32.mrb[4].mxu1 }
 0x391   : > { %v1588_v33 = vpop.f32.mrb[5].mxu1  ;;  %v1021_v41 = vadd.f32 %v1434_v37, %v1009_v32 }
 0x392   : > { %v1012_v34 = vpop.f32.mrb[6].mxu1 }
 0x393   : > { %v1589_v35 = vpop.f32.mrb[7].mxu1 }
 0x39e   : > { %v1112_v38 = vpop.f32.mrb[8].mxu0 }
 0x39f   : > { %v1113_v39 = vadd.f32 %v1112_v38, %v925_v36  ;;  %v1608_v40 = vpop.f32.mrb[9].mxu0 }
 0x3a0   : > { %v1115_v0 = vpop.f32.mrb[10].mxu0 }
 0x3a1   : > { %v1121_v42 = vrot.slane %v1113_v39, %v887_v3  ;;  %v1609_v43 = vpop.f32.mrb[11].mxu0 }
 0x3a3   : > { %v1122_v44 = vadd.f32 %v1121_v42, %v1021_v41 }
 0x3a5   : > { %v1123_v45 = vmax.f32 %v1122_v44, 0.0 }
 0x3a7   : > { %v1124_v46 = vadd.f32 %v1123_v45, %v891_v14 }
 0x3a9   : > { %v1142_v47 = vpack.c.bf16 %v1124_v46, %v1124_v46 }
 0x3ab   : > { %1627 = vmatmul.mubr.bf16.vlgmr.msra.gmra.mrb[8].mxu1 %v1142_v47 }
 0x47e   : > { %v1225_v49 = vpop.f32.mrb[8].mxu1 }
 0x47f   : > { %v1237_v50 = vadd.f32 %v1451_v48, %v1225_v49  ;;  %v1628_v51 = vpop.f32.mrb[9].mxu1 }
 0x480   : > { %v1228_v52 = vpop.f32.mrb[10].mxu1 }
 0x481   : > { %1238 = vst [vmem:[%s542_s20] sm:$0xff] %v1237_v50  ;;  %v1629_v53 = vpop.f32.mrb[11].mxu1 }
 0x482   : > { %2000 = shalt.err (!%p1997_p3)
}
 0x483   : > { %s2001_s1 = scalar_lea.hbm %s2535_s12, 128  ;;  %s2005_s18 = scalar_lea.hbm %s2624_s19, 256 }
 0x484   : > { %p2002_p4 = scmp.ne.s32.totalorder %s2535_s12, %s2001_s1  ;;  %p2006_p8 = scmp.lt.u32.totalorder %s2535_s12, %s2624_s19 }
 0x485   : > { %p2007_p5 = scmp.lt.u32.totalorder %s2005_s18, %s2001_s1  ;;  %p2009_p6 = scmp.lt.u32.totalorder %s2001_s1, %s2535_s12 }
 0x486   : > { %p2003_p10 = pnand %p2002_p4, %p2625_p9 }
 0x487   : > { %p2008_p7 = por %p2007_p5, %p2006_p8 }
 0x488   : > { %p2004_p11 = pneg %p2003_p10 }
 0x489   : > { %p2010_p12 = por %p2009_p6, %p2008_p7 }
 0x48b   : > { %p2011_p1 = pnand %p2010_p12, %p2004_p11 }
 0x48d   : > { %2014 = shalt.err (!%p2011_p1)
}
 0x48e   : > { %1656 = dma.vmem_to_hbm [thread:$0]  (%p2625_p9), %s2537_s13, 128, %s2535_s12, %s1240_s14  }
 0x48f PF: > { %s1265_s29 = sand.u32 1, %s2053_s25   ;;  %p2626_p13 = scmp.ne.s32.totalorder %s2611_s24, 0 }
 0x490   : > { %p2627_p0 = scmp.ge.s32.totalorder %s2065_s28, 2  ;;  %s1266_s17 = scalar_lea.sflag [#allocation4], %s1265_s29 }
 0x492   : > { %p1682_p2 = pnand %p2627_p0, %p2626_p13 }
 0x494   : > { %2048 = dma.done.wait (!%p1682_p2), %s1266_s17, 128  }
 0x495   : > { %2050 = vsyncadd (!%p1682_p2), %s1266_s17, 4294967168  ;;  %p29_p3 = scmp.ge.s32.totalorder %s2343_s16, 4   ;;  %s2628_s25 = smov %s2057_s26 }
 0x496   : > { %s2629_s26 = smov %s2061_s27  ;;  %s2630_s27 = smov %s2354_s8 }
 0x497   : > { %s2631_s28 = smov %s2343_s16  ;;  %31 = sbr.rel (!%p29_p3) target bundleno = 15 (0xf), region = 141 }
 0x49e   :  { %1271 = vsyncpa [#allocation3], 1 }
 0x49f   :  { %1273 = vsyncpa [#allocation3 + $0x1], 1 }
 0x4a0   :  { %1274 = vsyncpa [#allocation6], 1 }
 0x4a1   :  { %1275 = vsyncpa [#allocation9], 1 }
 0x4a2   :  { %1276 = vsyncpa [#allocation12], 1 }
 0x4a3   :  { %1277 = vsyncpa [#allocation4], 1 }
 0x4a4   :  { %1279 = vsyncpa [#allocation4 + $0x1], 1 }

</bundles_post_ra>
